<compile_context>
chip_gen: v6e
topology: v6e:2x2x1
jax: 0.10.0
libtpu: 0.0.40
codegen_flags: <defaults>
</compile_context>

<pallas_src>
import functools
import math

import jax
import jax.numpy as jnp
from jax.experimental import pallas as pl
from jax.experimental.pallas import tpu as pltpu


# ---------------------------------------------------------------------------
# Packed "small" parameter array row layout (each row is (D,), f32).
# ---------------------------------------------------------------------------
_SA_BQ, _SA_BK, _SA_BV, _SA_BO = 0, 1, 2, 3
_CA_BQ, _CA_BK, _CA_BV, _CA_BO = 4, 5, 6, 7
_FF_B2 = 8
_LN1_G, _LN1_B, _LN2_G, _LN2_B, _LN3_G, _LN3_B = 9, 10, 11, 12, 13, 14
_SMALL_ROWS = 16  # padded to a sublane-friendly row count

# Packed attention weight array slot layout (each slot is (D, D), bf16).
_SA_WQ, _SA_WK, _SA_WV, _SA_WO = 0, 1, 2, 3
_CA_WQ, _CA_WK, _CA_WV, _CA_WO = 4, 5, 6, 7


# ---------------------------------------------------------------------------
# Pure-jnp math shared by the Pallas kernel and the pure-JAX reference.
# ---------------------------------------------------------------------------
def _layer_norm(x, gamma, beta, eps):
    # One-pass statistics: the two cross-lane reductions can issue back-to-back.
    n = x.shape[-1]
    mean = jnp.sum(x, axis=-1, keepdims=True) * (1.0 / n)
    mean_sq = jnp.sum(x * x, axis=-1, keepdims=True) * (1.0 / n)
    var = mean_sq - mean * mean
    return (x - mean) * jax.lax.rsqrt(var + eps) * gamma + beta


def _mha(q_in, kv_in, bias, wq, wk, wv, wo, bq, bk, bv, bo,
         num_heads, use_approx_recip):
    """Multi-head attention for one batch element.

    q_in : (S_q, D) f32        kv_in : (S_k, D) f32
    bias : (S_q or 1, S_k) f32 additive attention bias (0 attend / -1e9 masked)
    wq/wk/wv/wo : (D, D) bf16 (x @ W orientation, nn.Linear column layout)
    bq/bk/bv/bo : (D,) f32
    """
    S_q, D = q_in.shape
    H = num_heads
    dk = D // H
    scale = 1.0 / math.sqrt(dk)

    q_b = q_in.astype(jnp.bfloat16)
    kv_b = kv_in.astype(jnp.bfloat16)

    # Full-width lane-dense projections: (S, D) x (D, D), f32 accumulation.
    q_p = (jnp.dot(q_b, wq, preferred_element_type=jnp.float32) + bq
           ).astype(jnp.bfloat16)
    k_p = (jnp.dot(kv_b, wk, preferred_element_type=jnp.float32) + bk
           ).astype(jnp.bfloat16)
    v_p = (jnp.dot(kv_b, wv, preferred_element_type=jnp.float32) + bv
           ).astype(jnp.bfloat16)

    # Heads only exist for scores / softmax / context (static lane slices).
    ctx_heads = []
    for h in range(H):
        sl = slice(h * dk, (h + 1) * dk)
        q_h = q_p[:, sl]                      # (S_q, dk)
        k_h = k_p[:, sl]                      # (S_k, dk)
        v_h = v_p[:, sl]                      # (S_k, dk)

        # Scores contract dk directly (no K transpose materialized).
        s = jnp.einsum('qd,kd->qk', q_h, k_h,
                       preferred_element_type=jnp.float32) * scale + bias

        # Softmax in f32 (max-subtracted); EUP approx reciprocal for the denom.
        s = s - jnp.max(s, axis=-1, keepdims=True)
        p = jnp.exp(s)
        denom = jnp.sum(p, axis=-1, keepdims=True)
        inv = (pl.reciprocal(denom, approx=True) if use_approx_recip
               else 1.0 / denom)
        p = (p * inv).astype(jnp.bfloat16)

        ctx_heads.append(jnp.dot(p, v_h, preferred_element_type=jnp.float32))

    # Concat heads once -> single K=D output projection (full MXU depth).
    ctx = jnp.concatenate(ctx_heads, axis=-1).astype(jnp.bfloat16)   # (S_q, D)
    return jnp.dot(ctx, wo, preferred_element_type=jnp.float32) + bo


def _decoder_block_math(y, o, x_bias, y_bias, w_attn, w_ff1, w_ff2, small,
                        ff_b1, *, num_heads, eps, use_approx_recip):
    """One DecoderBlock on a single batch element (all args are jnp values).

    w_attn : (8, D, D) bf16   w_ff1 : (D, D_ff) bf16   w_ff2 : (D_ff, D) bf16
    small  : (16, D)  f32     ff_b1 : (1, D_ff) f32
    """
    # self-attention + residual + norm   (dropout == identity in inference)
    sa = _mha(y, y, y_bias,
              w_attn[_SA_WQ], w_attn[_SA_WK], w_attn[_SA_WV], w_attn[_SA_WO],
              small[_SA_BQ], small[_SA_BK], small[_SA_BV], small[_SA_BO],
              num_heads, use_approx_recip)
    x1 = _layer_norm(sa + y, small[_LN1_G], small[_LN1_B], eps)

    # cross-attention + residual + norm
    ca = _mha(x1, o, x_bias,
              w_attn[_CA_WQ], w_attn[_CA_WK], w_attn[_CA_WV], w_attn[_CA_WO],
              small[_CA_BQ], small[_CA_BK], small[_CA_BV], small[_CA_BO],
              num_heads, use_approx_recip)
    x2 = _layer_norm(ca + x1, small[_LN2_G], small[_LN2_B], eps)

    # feed-forward (Linear -> ReLU -> Linear) + residual + norm
    h = jnp.dot(x2.astype(jnp.bfloat16), w_ff1,
                preferred_element_type=jnp.float32) + ff_b1
    h = jnp.maximum(h, 0.0)
    ff = jnp.dot(h.astype(jnp.bfloat16), w_ff2,
                 preferred_element_type=jnp.float32) + small[_FF_B2]
    return _layer_norm(ff + x2, small[_LN3_G], small[_LN3_B], eps)


# ---------------------------------------------------------------------------
# Pallas kernel: the FULL decoder stack.  grid = (B, L); one batch element and
# one layer per grid step.  Y is carried across l in the resident output block.
# ---------------------------------------------------------------------------
def _decoder_stack_kernel(num_heads, eps, y_ref, o_ref, xb_ref, yb_ref,
                          wattn_ref, wff1_ref, wff2_ref, small_ref, ffb1_ref,
                          out_ref):
    l = pl.program_id(1)

    @pl.when(l == 0)
    def _():
        out_ref[0] = y_ref[0]          # initialize the carry with the input Y

    y_cur = out_ref[0]                 # resident across l (constant block idx)
    out_ref[0] = _decoder_block_math(
        y_cur, o_ref[0], xb_ref[0], yb_ref[0],
        wattn_ref[0], wff1_ref[0], wff2_ref[0], small_ref[0], ffb1_ref[0],
        num_heads=num_heads, eps=eps, use_approx_recip=True)


def decoder_pallas(Y, O, X_mask, Y_mask, stacked, *, num_heads, eps):
    """Runs the whole L-layer decoder stack in one pallas_call."""
    # Masks converted ONCE to additive biases (mask>0 -> 0, else -1e9).
    x_bias = jnp.where(X_mask > 0, 0.0, -1e9).astype(jnp.float32)
    y_bias = jnp.where(Y_mask > 0, 0.0, -1e9).astype(jnp.float32)

    w_attn, w_ff1, w_ff2, small, ff_b1 = stacked
    L = w_attn.shape[0]
    B, S_t, D = Y.shape
    S_s = O.shape[1]
    D_ff = w_ff1.shape[-1]

    # Per-batch data: block index depends only on b -> not re-fetched across l.
    data_specs = [
        pl.BlockSpec((1, S_t, D), lambda b, l: (b, 0, 0)),       # Y (layer-0 in)
        pl.BlockSpec((1, S_s, D), lambda b, l: (b, 0, 0)),       # encoder output
        pl.BlockSpec((1, 1, S_s), lambda b, l: (b, 0, 0)),       # cross-attn bias
        pl.BlockSpec((1, S_t, S_t), lambda b, l: (b, 0, 0)),     # self-attn bias
    ]
    # Per-layer weights: block index depends only on l -> next layer's weights
    # DMA (default double buffering) overlaps the current layer's compute.
    # NOTE: on v7x (64 MiB VMEM) at production D/D_ff, stream w_ff1/w_ff2 in
    # K-tiles (extra grid axis or pltpu.emit_pipeline) to stay within budget.
    w_specs = [
        pl.BlockSpec((1, 8, D, D), lambda b, l: (l, 0, 0, 0)),   # attn weights
        pl.BlockSpec((1, D, D_ff), lambda b, l: (l, 0, 0)),      # FFN w1 (bf16)
        pl.BlockSpec((1, D_ff, D), lambda b, l: (l, 0, 0)),      # FFN w2 (bf16)
        pl.BlockSpec((1, _SMALL_ROWS, D), lambda b, l: (l, 0, 0)),  # biases/LN
        pl.BlockSpec((1, 1, D_ff), lambda b, l: (l, 0, 0)),      # FFN b1
    ]

    kernel = functools.partial(_decoder_stack_kernel, num_heads, eps)
    return pl.pallas_call(
        kernel,
        out_shape=jax.ShapeDtypeStruct((B, S_t, D), jnp.float32),
        grid_spec=pltpu.PrefetchScalarGridSpec(
            num_scalar_prefetch=0,
            grid=(B, L),                     # L innermost: sequential carry
            in_specs=data_specs + w_specs,
            out_specs=pl.BlockSpec((1, S_t, D), lambda b, l: (b, 0, 0)),
        ),
        compiler_params=pltpu.CompilerParams(
            dimension_semantics=("parallel", "arbitrary"),   # B over both TCs
            vmem_limit_bytes=48 * 1024 * 1024,               # v7x-safe headroom
        ),
    )(Y, O, x_bias, y_bias, w_attn, w_ff1, w_ff2, small, ff_b1)


# ---------------------------------------------------------------------------
# Parameter init (PyTorch-module-shaped) and packing into kernel layout.
# ---------------------------------------------------------------------------
def init_layer_params(key, d_model, d_ff):
    ks = jax.random.split(key, 10)

    def lin(k, din, dout):
        w = jax.random.normal(k, (din, dout), jnp.float32) * 0.02
        b = jnp.zeros((1, dout), jnp.float32)
        return w, b

    sa_wq, sa_bq = lin(ks[0], d_model, d_model)
    sa_wk, sa_bk = lin(ks[1], d_model, d_model)
    sa_wv, sa_bv = lin(ks[2], d_model, d_model)
    sa_wo, sa_bo = lin(ks[3], d_model, d_model)
    ca_wq, ca_bq = lin(ks[4], d_model, d_model)
    ca_wk, ca_bk = lin(ks[5], d_model, d_model)
    ca_wv, ca_bv = lin(ks[6], d_model, d_model)
    ca_wo, ca_bo = lin(ks[7], d_model, d_model)
    ff_w1, ff_b1 = lin(ks[8], d_model, d_ff)
    ff_w2, ff_b2 = lin(ks[9], d_ff, d_model)

    ones = jnp.ones((1, d_model), jnp.float32)
    zeros = jnp.zeros((1, d_model), jnp.float32)
    return (sa_wq, sa_bq, sa_wk, sa_bk, sa_wv, sa_bv, sa_wo, sa_bo,
            ones, zeros,
            ca_wq, ca_bq, ca_wk, ca_bk, ca_wv, ca_bv, ca_wo, ca_bo,
            ones, zeros,
            ff_w1, ff_b1, ff_w2, ff_b2,
            ones, zeros)


def pack_layer_params(params):
    (sa_wq, sa_bq, sa_wk, sa_bk, sa_wv, sa_bv, sa_wo, sa_bo,
     ln1_g, ln1_b,
     ca_wq, ca_bq, ca_wk, ca_bk, ca_wv, ca_bv, ca_wo, ca_bo,
     ln2_g, ln2_b,
     ff_w1, ff_b1, ff_w2, ff_b2,
     ln3_g, ln3_b) = params
    D = sa_wq.shape[0]

    w_attn = jnp.stack([sa_wq, sa_wk, sa_wv, sa_wo,
                        ca_wq, ca_wk, ca_wv, ca_wo]).astype(jnp.bfloat16)

    rows = [sa_bq, sa_bk, sa_bv, sa_bo,
            ca_bq, ca_bk, ca_bv, ca_bo,
            ff_b2, ln1_g, ln1_b, ln2_g, ln2_b, ln3_g, ln3_b]
    small = jnp.concatenate(
        [r.reshape(1, D) for r in rows] +
        [jnp.zeros((_SMALL_ROWS - len(rows), D), jnp.float32)],
        axis=0).astype(jnp.float32)                                # (16, D)

    return (w_attn,
            ff_w1.astype(jnp.bfloat16), ff_w2.astype(jnp.bfloat16),
            small, ff_b1.astype(jnp.float32))


def stack_layer_params(packed_layers):
    """[(w_attn, w_ff1, w_ff2, small, ff_b1)] * L  ->  arrays with leading L."""
    return tuple(jnp.stack(xs, axis=0) for xs in zip(*packed_layers))


# ---------------------------------------------------------------------------
# Pure-JAX reference (same packed weights / same bf16 matmul math, exact
# softmax division), layer loop in Python, vmapped over batch.
# ---------------------------------------------------------------------------
def decoder_ref(Y, O, X_mask, Y_mask, stacked, *, num_heads, eps):
    x_bias = jnp.where(X_mask > 0, 0.0, -1e9).astype(jnp.float32)
    y_bias = jnp.where(Y_mask > 0, 0.0, -1e9).astype(jnp.float32)
    w_attn, w_ff1, w_ff2, small, ff_b1 = stacked
    L = w_attn.shape[0]

    def one(y, o, xb, yb, wa, w1, w2, sm, fb1):
        return _decoder_block_math(y, o, xb, yb, wa, w1, w2, sm, fb1,
                                   num_heads=num_heads, eps=eps,
                                   use_approx_recip=False)

    for l in range(L):
        Y = jax.vmap(one, in_axes=(0, 0, 0, 0, None, None, None, None, None))(
            Y, O, x_bias, y_bias,
            w_attn[l], w_ff1[l], w_ff2[l], small[l], ff_b1[l])
    return Y


# ---------------------------------------------------------------------------
if __name__ == "__main__":
    key = jax.random.PRNGKey(0)
    B, S_TGT, S_SRC = 2, 8, 8
    D_MODEL, NUM_HEADS, D_FF, NUM_LAYERS = 128, 4, 256, 2   # D multiple of 128
    NORM_EPS = 1e-6
    # TODO(synk): dropout has no effect in inference mode, so it is omitted.

    k_y, k_o, k_p = jax.random.split(key, 3)
    Y = jax.random.normal(k_y, (B, S_TGT, D_MODEL), jnp.float32)
    O = jax.random.normal(k_o, (B, S_SRC, D_MODEL), jnp.float32)
    Y_mask = jnp.broadcast_to(
        jnp.tril(jnp.ones((S_TGT, S_TGT), jnp.float32)), (B, S_TGT, S_TGT))
    X_mask = jnp.ones((B, 1, S_SRC), jnp.float32)

    layer_keys = jax.random.split(k_p, NUM_LAYERS)
    raw_layers = [init_layer_params(k, D_MODEL, D_FF) for k in layer_keys]
    stacked = stack_layer_params([pack_layer_params(p) for p in raw_layers])

    out = decoder_pallas(Y, O, X_mask, Y_mask, stacked,
                         num_heads=NUM_HEADS, eps=NORM_EPS)
    out = jax.block_until_ready(out)

    ref = decoder_ref(Y, O, X_mask, Y_mask, stacked,
                      num_heads=NUM_HEADS, eps=NORM_EPS)
    assert out.shape == (B, S_TGT, D_MODEL)
    assert jnp.allclose(out, ref, atol=3e-2, rtol=3e-2), (
        "Pallas vs JAX reference mismatch: max abs err = "
        f"{jnp.max(jnp.abs(out - ref))}")
    print("KERNEL_OK")
</pallas_src>

<mosaic_0001>
module attributes {stable_mosaic.version = 11 : i64} {
  func.func @_decoder_stack_kernel(%arg0: i32, %arg1: i32, %arg2: memref<1x8x128xf32, #tpu.memory_space<vmem>>, %arg3: memref<1x8x128xf32, #tpu.memory_space<vmem>>, %arg4: memref<1x1x8xf32, #tpu.memory_space<vmem>>, %arg5: memref<1x8x8xf32, #tpu.memory_space<vmem>>, %arg6: memref<1x8x128x128xbf16, #tpu.memory_space<vmem>>, %arg7: memref<1x128x256xbf16, #tpu.memory_space<vmem>>, %arg8: memref<1x256x128xbf16, #tpu.memory_space<vmem>>, %arg9: memref<1x16x128xf32, #tpu.memory_space<vmem>>, %arg10: memref<1x1x256xf32, #tpu.memory_space<vmem>>, %arg11: memref<1x8x128xf32, #tpu.memory_space<vmem>>) attributes {dimension_semantics = [#tpu.dimension_semantics<parallel>, #tpu.dimension_semantics<arbitrary>], iteration_bounds = array<i64: 2, 2>, scalar_prefetch = 0 : i64, scratch_operands = 0 : i64, tpu.core_type = #tpu.core_type<tc>, window_params = [{transform_indices = @transform_0, window_bounds = array<i64: 1, 8, 128>}, {transform_indices = @transform_1, window_bounds = array<i64: 1, 8, 128>}, {transform_indices = @transform_2, window_bounds = array<i64: 1, 1, 8>}, {transform_indices = @transform_3, window_bounds = array<i64: 1, 8, 8>}, {transform_indices = @transform_4, window_bounds = array<i64: 1, 8, 128, 128>}, {transform_indices = @transform_5, window_bounds = array<i64: 1, 128, 256>}, {transform_indices = @transform_6, window_bounds = array<i64: 1, 256, 128>}, {transform_indices = @transform_7, window_bounds = array<i64: 1, 16, 128>}, {transform_indices = @transform_8, window_bounds = array<i64: 1, 1, 256>}, {transform_indices = @transform_9, window_bounds = array<i64: 1, 8, 128>}]} {
    %c0_i32 = arith.constant 0 : i32
    %0 = arith.cmpi eq, %arg1, %c0_i32 : i32
    %1 = arith.extui %0 : i1 to i32
    %c0_i32_0 = arith.constant 0 : i32
    %2 = arith.cmpi ne, %1, %c0_i32_0 : i32
    scf.if %2 {
      %c0_96 = arith.constant 0 : index
      %c0_97 = arith.constant 0 : index
      %c0_98 = arith.constant 0 : index
      %358 = vector.load %arg2[%c0_96, %c0_97, %c0_98] : memref<1x8x128xf32, #tpu.memory_space<vmem>>, vector<1x8x128xf32>
      %359 = vector.shape_cast %358 : vector<1x8x128xf32> to vector<8x128xf32>
      %c0_99 = arith.constant 0 : index
      %c0_100 = arith.constant 0 : index
      %c0_101 = arith.constant 0 : index
      %360 = vector.load %arg11[%c0_99, %c0_100, %c0_101] : memref<1x8x128xf32, #tpu.memory_space<vmem>>, vector<1x8x128xf32>
      %361 = vector.shape_cast %360 : vector<1x8x128xf32> to vector<8x128xf32>
      %362 = vector.shape_cast %359 : vector<8x128xf32> to vector<1x8x128xf32>
      tpu.vector_store %arg11[%c0_99, %c0_100, %c0_101], %362 {strides = array<i32>} : memref<1x8x128xf32, #tpu.memory_space<vmem>>, vector<1x8x128xf32>,
    } else {
    }
    %c0 = arith.constant 0 : index
    %c0_1 = arith.constant 0 : index
    %c0_2 = arith.constant 0 : index
    %3 = vector.load %arg11[%c0, %c0_1, %c0_2] : memref<1x8x128xf32, #tpu.memory_space<vmem>>, vector<1x8x128xf32>
    %4 = vector.shape_cast %3 : vector<1x8x128xf32> to vector<8x128xf32>
    %c0_3 = arith.constant 0 : index
    %c0_4 = arith.constant 0 : index
    %c0_5 = arith.constant 0 : index
    %5 = vector.load %arg3[%c0_3, %c0_4, %c0_5] : memref<1x8x128xf32, #tpu.memory_space<vmem>>, vector<1x8x128xf32>
    %6 = vector.shape_cast %5 : vector<1x8x128xf32> to vector<8x128xf32>
    %c0_6 = arith.constant 0 : index
    %c0_7 = arith.constant 0 : index
    %c0_8 = arith.constant 0 : index
    %7 = vector.load %arg4[%c0_6, %c0_7, %c0_8] : memref<1x1x8xf32, #tpu.memory_space<vmem>>, vector<1x1x8xf32>
    %8 = vector.shape_cast %7 : vector<1x1x8xf32> to vector<1x8xf32>
    %c0_9 = arith.constant 0 : index
    %c0_10 = arith.constant 0 : index
    %c0_11 = arith.constant 0 : index
    %9 = vector.load %arg5[%c0_9, %c0_10, %c0_11] : memref<1x8x8xf32, #tpu.memory_space<vmem>>, vector<1x8x8xf32>
    %10 = vector.shape_cast %9 : vector<1x8x8xf32> to vector<8x8xf32>
    %c0_12 = arith.constant 0 : index
    %c0_13 = arith.constant 0 : index
    %c0_14 = arith.constant 0 : index
    %c0_15 = arith.constant 0 : index
    %11 = vector.load %arg6[%c0_12, %c0_13, %c0_14, %c0_15] : memref<1x8x128x128xbf16, #tpu.memory_space<vmem>>, vector<1x8x128x128xbf16>
    %12 = vector.shape_cast %11 : vector<1x8x128x128xbf16> to vector<8x128x128xbf16>
    %c0_16 = arith.constant 0 : index
    %c0_17 = arith.constant 0 : index
    %c0_18 = arith.constant 0 : index
    %13 = vector.load %arg7[%c0_16, %c0_17, %c0_18] : memref<1x128x256xbf16, #tpu.memory_space<vmem>>, vector<1x128x256xbf16>
    %14 = vector.shape_cast %13 : vector<1x128x256xbf16> to vector<128x256xbf16>
    %c0_19 = arith.constant 0 : index
    %c0_20 = arith.constant 0 : index
    %c0_21 = arith.constant 0 : index
    %15 = vector.load %arg8[%c0_19, %c0_20, %c0_21] : memref<1x256x128xbf16, #tpu.memory_space<vmem>>, vector<1x256x128xbf16>
    %16 = vector.shape_cast %15 : vector<1x256x128xbf16> to vector<256x128xbf16>
    %c0_22 = arith.constant 0 : index
    %c0_23 = arith.constant 0 : index
    %c0_24 = arith.constant 0 : index
    %17 = vector.load %arg9[%c0_22, %c0_23, %c0_24] : memref<1x16x128xf32, #tpu.memory_space<vmem>>, vector<1x16x128xf32>
    %18 = vector.shape_cast %17 : vector<1x16x128xf32> to vector<16x128xf32>
    %c0_25 = arith.constant 0 : index
    %c0_26 = arith.constant 0 : index
    %c0_27 = arith.constant 0 : index
    %19 = vector.load %arg10[%c0_25, %c0_26, %c0_27] : memref<1x1x256xf32, #tpu.memory_space<vmem>>, vector<1x1x256xf32>
    %20 = vector.shape_cast %19 : vector<1x1x256xf32> to vector<1x256xf32>
    %21 = vector.extract_strided_slice %12 {offsets = [0, 0, 0], sizes = [1, 128, 128], strides = [1, 1, 1]} : vector<8x128x128xbf16> to vector<1x128x128xbf16>
    %22 = vector.shape_cast %21 : vector<1x128x128xbf16> to vector<128x128xbf16>
    %23 = vector.extract_strided_slice %12 {offsets = [1, 0, 0], sizes = [1, 128, 128], strides = [1, 1, 1]} : vector<8x128x128xbf16> to vector<1x128x128xbf16>
    %24 = vector.shape_cast %23 : vector<1x128x128xbf16> to vector<128x128xbf16>
    %25 = vector.extract_strided_slice %12 {offsets = [2, 0, 0], sizes = [1, 128, 128], strides = [1, 1, 1]} : vector<8x128x128xbf16> to vector<1x128x128xbf16>
    %26 = vector.shape_cast %25 : vector<1x128x128xbf16> to vector<128x128xbf16>
    %27 = vector.extract_strided_slice %12 {offsets = [3, 0, 0], sizes = [1, 128, 128], strides = [1, 1, 1]} : vector<8x128x128xbf16> to vector<1x128x128xbf16>
    %28 = vector.shape_cast %27 : vector<1x128x128xbf16> to vector<128x128xbf16>
    %29 = vector.extract_strided_slice %18 {offsets = [0, 0], sizes = [1, 128], strides = [1, 1]} : vector<16x128xf32> to vector<1x128xf32>
    %30 = vector.shape_cast %29 : vector<1x128xf32> to vector<128xf32>
    %31 = vector.extract_strided_slice %18 {offsets = [1, 0], sizes = [1, 128], strides = [1, 1]} : vector<16x128xf32> to vector<1x128xf32>
    %32 = vector.shape_cast %31 : vector<1x128xf32> to vector<128xf32>
    %33 = vector.extract_strided_slice %18 {offsets = [2, 0], sizes = [1, 128], strides = [1, 1]} : vector<16x128xf32> to vector<1x128xf32>
    %34 = vector.shape_cast %33 : vector<1x128xf32> to vector<128xf32>
    %35 = vector.extract_strided_slice %18 {offsets = [3, 0], sizes = [1, 128], strides = [1, 1]} : vector<16x128xf32> to vector<1x128xf32>
    %36 = vector.shape_cast %35 : vector<1x128xf32> to vector<128xf32>
    %37 = arith.truncf %4 : vector<8x128xf32> to vector<8x128xbf16>
    %38 = arith.truncf %4 : vector<8x128xf32> to vector<8x128xbf16>
    %cst = arith.constant dense<0.000000e+00> : vector<8x128xf32>
    %39 = tpu.matmul %37, %22, %cst {dimension_numbers = #tpu.dot_dimension_numbers<[1], [0], [0], [1], [0, 0, 1, 1], [], []>} : vector<8x128xbf16>, vector<128x128xbf16>, vector<8x128xf32> -> vector<8x128xf32>
    %40 = vector.shape_cast %30 : vector<128xf32> to vector<1x128xf32>
    %41 = vector.broadcast %40 : vector<1x128xf32> to vector<8x128xf32>
    %42 = arith.addf %39, %41 : vector<8x128xf32>
    %43 = arith.truncf %42 : vector<8x128xf32> to vector<8x128xbf16>
    %cst_28 = arith.constant dense<0.000000e+00> : vector<8x128xf32>
    %44 = tpu.matmul %38, %24, %cst_28 {dimension_numbers = #tpu.dot_dimension_numbers<[1], [0], [0], [1], [0, 0, 1, 1], [], []>} : vector<8x128xbf16>, vector<128x128xbf16>, vector<8x128xf32> -> vector<8x128xf32>
    %45 = vector.shape_cast %32 : vector<128xf32> to vector<1x128xf32>
    %46 = vector.broadcast %45 : vector<1x128xf32> to vector<8x128xf32>
    %47 = arith.addf %44, %46 : vector<8x128xf32>
    %48 = arith.truncf %47 : vector<8x128xf32> to vector<8x128xbf16>
    %cst_29 = arith.constant dense<0.000000e+00> : vector<8x128xf32>
    %49 = tpu.matmul %38, %26, %cst_29 {dimension_numbers = #tpu.dot_dimension_numbers<[1], [0], [0], [1], [0, 0, 1, 1], [], []>} : vector<8x128xbf16>, vector<128x128xbf16>, vector<8x128xf32> -> vector<8x128xf32>
    %50 = vector.shape_cast %34 : vector<128xf32> to vector<1x128xf32>
    %51 = vector.broadcast %50 : vector<1x128xf32> to vector<8x128xf32>
    %52 = arith.addf %49, %51 : vector<8x128xf32>
    %53 = arith.truncf %52 : vector<8x128xf32> to vector<8x128xbf16>
    %54 = vector.extract_strided_slice %43 {offsets = [0, 0], sizes = [8, 32], strides = [1, 1]} : vector<8x128xbf16> to vector<8x32xbf16>
    %55 = vector.extract_strided_slice %48 {offsets = [0, 0], sizes = [8, 32], strides = [1, 1]} : vector<8x128xbf16> to vector<8x32xbf16>
    %56 = vector.extract_strided_slice %53 {offsets = [0, 0], sizes = [8, 32], strides = [1, 1]} : vector<8x128xbf16> to vector<8x32xbf16>
    "tpu.trace_start"() <{level = 10 : i32, message = "qd,kd->qk"}> : () -> ()
    %cst_30 = arith.constant dense<0.000000e+00> : vector<8x8xf32>
    %57 = tpu.matmul %54, %55, %cst_30 {dimension_numbers = #tpu.dot_dimension_numbers<[1], [1], [0], [0], [0, 0, 1, 0], [], []>} : vector<8x32xbf16>, vector<8x32xbf16>, vector<8x8xf32> -> vector<8x8xf32>
    "tpu.trace_stop"() : () -> ()
    %cst_31 = arith.constant 0.176776692 : f32
    %58 = vector.broadcast %cst_31 : f32 to vector<8x8xf32>
    %59 = arith.mulf %57, %58 : vector<8x8xf32>
    %60 = arith.addf %59, %10 : vector<8x8xf32>
    %cst_32 = arith.constant dense<0xFF800000> : vector<8xf32>
    %61 = vector.multi_reduction <maximumf>, %60, %cst_32 [1] : vector<8x8xf32> to vector<8xf32>
    %62 = vector.shape_cast %61 : vector<8xf32> to vector<8x1xf32>
    %63 = vector.broadcast %62 : vector<8x1xf32> to vector<8x8xf32>
    %64 = arith.subf %60, %63 : vector<8x8xf32>
    %65 = math.exp %64 : vector<8x8xf32>
    %cst_33 = arith.constant dense<0.000000e+00> : vector<8xf32>
    %66 = vector.multi_reduction <add>, %65, %cst_33 [1] : vector<8x8xf32> to vector<8xf32>
    %67 = vector.shape_cast %66 : vector<8xf32> to vector<8x1xf32>
    %68 = tpu.reciprocal %67 {approx = true} : vector<8x1xf32> -> vector<8x1xf32>
    %69 = vector.broadcast %68 : vector<8x1xf32> to vector<8x8xf32>
    %70 = arith.mulf %65, %69 : vector<8x8xf32>
    %71 = arith.truncf %70 : vector<8x8xf32> to vector<8x8xbf16>
    %cst_34 = arith.constant dense<0.000000e+00> : vector<8x32xf32>
    %72 = tpu.matmul %71, %56, %cst_34 {dimension_numbers = #tpu.dot_dimension_numbers<[1], [0], [0], [1], [0, 0, 1, 1], [], []>} : vector<8x8xbf16>, vector<8x32xbf16>, vector<8x32xf32> -> vector<8x32xf32>
    %73 = vector.extract_strided_slice %43 {offsets = [0, 32], sizes = [8, 32], strides = [1, 1]} : vector<8x128xbf16> to vector<8x32xbf16>
    %74 = vector.extract_strided_slice %48 {offsets = [0, 32], sizes = [8, 32], strides = [1, 1]} : vector<8x128xbf16> to vector<8x32xbf16>
    %75 = vector.extract_strided_slice %53 {offsets = [0, 32], sizes = [8, 32], strides = [1, 1]} : vector<8x128xbf16> to vector<8x32xbf16>
    "tpu.trace_start"() <{level = 10 : i32, message = "qd,kd->qk"}> : () -> ()
    %cst_35 = arith.constant dense<0.000000e+00> : vector<8x8xf32>
    %76 = tpu.matmul %73, %74, %cst_35 {dimension_numbers = #tpu.dot_dimension_numbers<[1], [1], [0], [0], [0, 0, 1, 0], [], []>} : vector<8x32xbf16>, vector<8x32xbf16>, vector<8x8xf32> -> vector<8x8xf32>
    "tpu.trace_stop"() : () -> ()
    %cst_36 = arith.constant 0.176776692 : f32
    %77 = vector.broadcast %cst_36 : f32 to vector<8x8xf32>
    %78 = arith.mulf %76, %77 : vector<8x8xf32>
    %79 = arith.addf %78, %10 : vector<8x8xf32>
    %cst_37 = arith.constant dense<0xFF800000> : vector<8xf32>
    %80 = vector.multi_reduction <maximumf>, %79, %cst_37 [1] : vector<8x8xf32> to vector<8xf32>
    %81 = vector.shape_cast %80 : vector<8xf32> to vector<8x1xf32>
    %82 = vector.broadcast %81 : vector<8x1xf32> to vector<8x8xf32>
    %83 = arith.subf %79, %82 : vector<8x8xf32>
    %84 = math.exp %83 : vector<8x8xf32>
    %cst_38 = arith.constant dense<0.000000e+00> : vector<8xf32>
    %85 = vector.multi_reduction <add>, %84, %cst_38 [1] : vector<8x8xf32> to vector<8xf32>
    %86 = vector.shape_cast %85 : vector<8xf32> to vector<8x1xf32>
    %87 = tpu.reciprocal %86 {approx = true} : vector<8x1xf32> -> vector<8x1xf32>
    %88 = vector.broadcast %87 : vector<8x1xf32> to vector<8x8xf32>
    %89 = arith.mulf %84, %88 : vector<8x8xf32>
    %90 = arith.truncf %89 : vector<8x8xf32> to vector<8x8xbf16>
    %cst_39 = arith.constant dense<0.000000e+00> : vector<8x32xf32>
    %91 = tpu.matmul %90, %75, %cst_39 {dimension_numbers = #tpu.dot_dimension_numbers<[1], [0], [0], [1], [0, 0, 1, 1], [], []>} : vector<8x8xbf16>, vector<8x32xbf16>, vector<8x32xf32> -> vector<8x32xf32>
    %92 = vector.extract_strided_slice %43 {offsets = [0, 64], sizes = [8, 32], strides = [1, 1]} : vector<8x128xbf16> to vector<8x32xbf16>
    %93 = vector.extract_strided_slice %48 {offsets = [0, 64], sizes = [8, 32], strides = [1, 1]} : vector<8x128xbf16> to vector<8x32xbf16>
    %94 = vector.extract_strided_slice %53 {offsets = [0, 64], sizes = [8, 32], strides = [1, 1]} : vector<8x128xbf16> to vector<8x32xbf16>
    "tpu.trace_start"() <{level = 10 : i32, message = "qd,kd->qk"}> : () -> ()
    %cst_40 = arith.constant dense<0.000000e+00> : vector<8x8xf32>
    %95 = tpu.matmul %92, %93, %cst_40 {dimension_numbers = #tpu.dot_dimension_numbers<[1], [1], [0], [0], [0, 0, 1, 0], [], []>} : vector<8x32xbf16>, vector<8x32xbf16>, vector<8x8xf32> -> vector<8x8xf32>
    "tpu.trace_stop"() : () -> ()
    %cst_41 = arith.constant 0.176776692 : f32
    %96 = vector.broadcast %cst_41 : f32 to vector<8x8xf32>
    %97 = arith.mulf %95, %96 : vector<8x8xf32>
    %98 = arith.addf %97, %10 : vector<8x8xf32>
    %cst_42 = arith.constant dense<0xFF800000> : vector<8xf32>
    %99 = vector.multi_reduction <maximumf>, %98, %cst_42 [1] : vector<8x8xf32> to vector<8xf32>
    %100 = vector.shape_cast %99 : vector<8xf32> to vector<8x1xf32>
    %101 = vector.broadcast %100 : vector<8x1xf32> to vector<8x8xf32>
    %102 = arith.subf %98, %101 : vector<8x8xf32>
    %103 = math.exp %102 : vector<8x8xf32>
    %cst_43 = arith.constant dense<0.000000e+00> : vector<8xf32>
    %104 = vector.multi_reduction <add>, %103, %cst_43 [1] : vector<8x8xf32> to vector<8xf32>
    %105 = vector.shape_cast %104 : vector<8xf32> to vector<8x1xf32>
    %106 = tpu.reciprocal %105 {approx = true} : vector<8x1xf32> -> vector<8x1xf32>
    %107 = vector.broadcast %106 : vector<8x1xf32> to vector<8x8xf32>
    %108 = arith.mulf %103, %107 : vector<8x8xf32>
    %109 = arith.truncf %108 : vector<8x8xf32> to vector<8x8xbf16>
    %cst_44 = arith.constant dense<0.000000e+00> : vector<8x32xf32>
    %110 = tpu.matmul %109, %94, %cst_44 {dimension_numbers = #tpu.dot_dimension_numbers<[1], [0], [0], [1], [0, 0, 1, 1], [], []>} : vector<8x8xbf16>, vector<8x32xbf16>, vector<8x32xf32> -> vector<8x32xf32>
    %111 = vector.extract_strided_slice %43 {offsets = [0, 96], sizes = [8, 32], strides = [1, 1]} : vector<8x128xbf16> to vector<8x32xbf16>
    %112 = vector.extract_strided_slice %48 {offsets = [0, 96], sizes = [8, 32], strides = [1, 1]} : vector<8x128xbf16> to vector<8x32xbf16>
    %113 = vector.extract_strided_slice %53 {offsets = [0, 96], sizes = [8, 32], strides = [1, 1]} : vector<8x128xbf16> to vector<8x32xbf16>
    "tpu.trace_start"() <{level = 10 : i32, message = "qd,kd->qk"}> : () -> ()
    %cst_45 = arith.constant dense<0.000000e+00> : vector<8x8xf32>
    %114 = tpu.matmul %111, %112, %cst_45 {dimension_numbers = #tpu.dot_dimension_numbers<[1], [1], [0], [0], [0, 0, 1, 0], [], []>} : vector<8x32xbf16>, vector<8x32xbf16>, vector<8x8xf32> -> vector<8x8xf32>
    "tpu.trace_stop"() : () -> ()
    %cst_46 = arith.constant 0.176776692 : f32
    %115 = vector.broadcast %cst_46 : f32 to vector<8x8xf32>
    %116 = arith.mulf %114, %115 : vector<8x8xf32>
    %117 = arith.addf %116, %10 : vector<8x8xf32>
    %cst_47 = arith.constant dense<0xFF800000> : vector<8xf32>
    %118 = vector.multi_reduction <maximumf>, %117, %cst_47 [1] : vector<8x8xf32> to vector<8xf32>
    %119 = vector.shape_cast %118 : vector<8xf32> to vector<8x1xf32>
    %120 = vector.broadcast %119 : vector<8x1xf32> to vector<8x8xf32>
    %121 = arith.subf %117, %120 : vector<8x8xf32>
    %122 = math.exp %121 : vector<8x8xf32>
    %cst_48 = arith.constant dense<0.000000e+00> : vector<8xf32>
    %123 = vector.multi_reduction <add>, %122, %cst_48 [1] : vector<8x8xf32> to vector<8xf32>
    %124 = vector.shape_cast %123 : vector<8xf32> to vector<8x1xf32>
    %125 = tpu.reciprocal %124 {approx = true} : vector<8x1xf32> -> vector<8x1xf32>
    %126 = vector.broadcast %125 : vector<8x1xf32> to vector<8x8xf32>
    %127 = arith.mulf %122, %126 : vector<8x8xf32>
    %128 = arith.truncf %127 : vector<8x8xf32> to vector<8x8xbf16>
    %cst_49 = arith.constant dense<0.000000e+00> : vector<8x32xf32>
    %129 = tpu.matmul %128, %113, %cst_49 {dimension_numbers = #tpu.dot_dimension_numbers<[1], [0], [0], [1], [0, 0, 1, 1], [], []>} : vector<8x8xbf16>, vector<8x32xbf16>, vector<8x32xf32> -> vector<8x32xf32>
    %130 = tpu.concatenate %72, %91, %110, %129 in 1 : vector<8x32xf32>, vector<8x32xf32>, vector<8x32xf32>, vector<8x32xf32> -> vector<8x128xf32>
    %131 = arith.truncf %130 : vector<8x128xf32> to vector<8x128xbf16>
    %cst_50 = arith.constant dense<0.000000e+00> : vector<8x128xf32>
    %132 = tpu.matmul %131, %28, %cst_50 {dimension_numbers = #tpu.dot_dimension_numbers<[1], [0], [0], [1], [0, 0, 1, 1], [], []>} : vector<8x128xbf16>, vector<128x128xbf16>, vector<8x128xf32> -> vector<8x128xf32>
    %133 = vector.shape_cast %36 : vector<128xf32> to vector<1x128xf32>
    %134 = vector.broadcast %133 : vector<1x128xf32> to vector<8x128xf32>
    %135 = arith.addf %132, %134 : vector<8x128xf32>
    %136 = arith.addf %135, %4 : vector<8x128xf32>
    %137 = vector.extract_strided_slice %18 {offsets = [9, 0], sizes = [1, 128], strides = [1, 1]} : vector<16x128xf32> to vector<1x128xf32>
    %138 = vector.shape_cast %137 : vector<1x128xf32> to vector<128xf32>
    %139 = vector.extract_strided_slice %18 {offsets = [10, 0], sizes = [1, 128], strides = [1, 1]} : vector<16x128xf32> to vector<1x128xf32>
    %140 = vector.shape_cast %139 : vector<1x128xf32> to vector<128xf32>
    %cst_51 = arith.constant dense<0.000000e+00> : vector<8xf32>
    %141 = vector.multi_reduction <add>, %136, %cst_51 [1] : vector<8x128xf32> to vector<8xf32>
    %142 = vector.shape_cast %141 : vector<8xf32> to vector<8x1xf32>
    %cst_52 = arith.constant 7.812500e-03 : f32
    %143 = vector.broadcast %cst_52 : f32 to vector<8x1xf32>
    %144 = arith.mulf %142, %143 : vector<8x1xf32>
    %145 = arith.mulf %136, %136 : vector<8x128xf32>
    %cst_53 = arith.constant dense<0.000000e+00> : vector<8xf32>
    %146 = vector.multi_reduction <add>, %145, %cst_53 [1] : vector<8x128xf32> to vector<8xf32>
    %147 = vector.shape_cast %146 : vector<8xf32> to vector<8x1xf32>
    %cst_54 = arith.constant 7.812500e-03 : f32
    %148 = vector.broadcast %cst_54 : f32 to vector<8x1xf32>
    %149 = arith.mulf %147, %148 : vector<8x1xf32>
    %150 = arith.mulf %144, %144 : vector<8x1xf32>
    %151 = arith.subf %149, %150 : vector<8x1xf32>
    %152 = vector.broadcast %144 : vector<8x1xf32> to vector<8x128xf32>
    %153 = arith.subf %136, %152 : vector<8x128xf32>
    %cst_55 = arith.constant 9.99999997E-7 : f32
    %154 = vector.broadcast %cst_55 : f32 to vector<8x1xf32>
    %155 = arith.addf %151, %154 : vector<8x1xf32>
    %156 = math.rsqrt %155 : vector<8x1xf32>
    %157 = vector.broadcast %156 : vector<8x1xf32> to vector<8x128xf32>
    %158 = arith.mulf %153, %157 : vector<8x128xf32>
    %159 = vector.shape_cast %138 : vector<128xf32> to vector<1x128xf32>
    %160 = vector.broadcast %159 : vector<1x128xf32> to vector<8x128xf32>
    %161 = arith.mulf %158, %160 : vector<8x128xf32>
    %162 = vector.shape_cast %140 : vector<128xf32> to vector<1x128xf32>
    %163 = vector.broadcast %162 : vector<1x128xf32> to vector<8x128xf32>
    %164 = arith.addf %161, %163 : vector<8x128xf32>
    %165 = vector.extract_strided_slice %12 {offsets = [4, 0, 0], sizes = [1, 128, 128], strides = [1, 1, 1]} : vector<8x128x128xbf16> to vector<1x128x128xbf16>
    %166 = vector.shape_cast %165 : vector<1x128x128xbf16> to vector<128x128xbf16>
    %167 = vector.extract_strided_slice %12 {offsets = [5, 0, 0], sizes = [1, 128, 128], strides = [1, 1, 1]} : vector<8x128x128xbf16> to vector<1x128x128xbf16>
    %168 = vector.shape_cast %167 : vector<1x128x128xbf16> to vector<128x128xbf16>
    %169 = vector.extract_strided_slice %12 {offsets = [6, 0, 0], sizes = [1, 128, 128], strides = [1, 1, 1]} : vector<8x128x128xbf16> to vector<1x128x128xbf16>
    %170 = vector.shape_cast %169 : vector<1x128x128xbf16> to vector<128x128xbf16>
    %171 = vector.extract_strided_slice %12 {offsets = [7, 0, 0], sizes = [1, 128, 128], strides = [1, 1, 1]} : vector<8x128x128xbf16> to vector<1x128x128xbf16>
    %172 = vector.shape_cast %171 : vector<1x128x128xbf16> to vector<128x128xbf16>
    %173 = vector.extract_strided_slice %18 {offsets = [4, 0], sizes = [1, 128], strides = [1, 1]} : vector<16x128xf32> to vector<1x128xf32>
    %174 = vector.shape_cast %173 : vector<1x128xf32> to vector<128xf32>
    %175 = vector.extract_strided_slice %18 {offsets = [5, 0], sizes = [1, 128], strides = [1, 1]} : vector<16x128xf32> to vector<1x128xf32>
    %176 = vector.shape_cast %175 : vector<1x128xf32> to vector<128xf32>
    %177 = vector.extract_strided_slice %18 {offsets = [6, 0], sizes = [1, 128], strides = [1, 1]} : vector<16x128xf32> to vector<1x128xf32>
    %178 = vector.shape_cast %177 : vector<1x128xf32> to vector<128xf32>
    %179 = vector.extract_strided_slice %18 {offsets = [7, 0], sizes = [1, 128], strides = [1, 1]} : vector<16x128xf32> to vector<1x128xf32>
    %180 = vector.shape_cast %179 : vector<1x128xf32> to vector<128xf32>
    %181 = arith.truncf %164 : vector<8x128xf32> to vector<8x128xbf16>
    %182 = arith.truncf %6 : vector<8x128xf32> to vector<8x128xbf16>
    %cst_56 = arith.constant dense<0.000000e+00> : vector<8x128xf32>
    %183 = tpu.matmul %181, %166, %cst_56 {dimension_numbers = #tpu.dot_dimension_numbers<[1], [0], [0], [1], [0, 0, 1, 1], [], []>} : vector<8x128xbf16>, vector<128x128xbf16>, vector<8x128xf32> -> vector<8x128xf32>
    %184 = vector.shape_cast %174 : vector<128xf32> to vector<1x128xf32>
    %185 = vector.broadcast %184 : vector<1x128xf32> to vector<8x128xf32>
    %186 = arith.addf %183, %185 : vector<8x128xf32>
    %187 = arith.truncf %186 : vector<8x128xf32> to vector<8x128xbf16>
    %cst_57 = arith.constant dense<0.000000e+00> : vector<8x128xf32>
    %188 = tpu.matmul %182, %168, %cst_57 {dimension_numbers = #tpu.dot_dimension_numbers<[1], [0], [0], [1], [0, 0, 1, 1], [], []>} : vector<8x128xbf16>, vector<128x128xbf16>, vector<8x128xf32> -> vector<8x128xf32>
    %189 = vector.shape_cast %176 : vector<128xf32> to vector<1x128xf32>
    %190 = vector.broadcast %189 : vector<1x128xf32> to vector<8x128xf32>
    %191 = arith.addf %188, %190 : vector<8x128xf32>
    %192 = arith.truncf %191 : vector<8x128xf32> to vector<8x128xbf16>
    %cst_58 = arith.constant dense<0.000000e+00> : vector<8x128xf32>
    %193 = tpu.matmul %182, %170, %cst_58 {dimension_numbers = #tpu.dot_dimension_numbers<[1], [0], [0], [1], [0, 0, 1, 1], [], []>} : vector<8x128xbf16>, vector<128x128xbf16>, vector<8x128xf32> -> vector<8x128xf32>
    %194 = vector.shape_cast %178 : vector<128xf32> to vector<1x128xf32>
    %195 = vector.broadcast %194 : vector<1x128xf32> to vector<8x128xf32>
    %196 = arith.addf %193, %195 : vector<8x128xf32>
    %197 = arith.truncf %196 : vector<8x128xf32> to vector<8x128xbf16>
    %198 = vector.extract_strided_slice %187 {offsets = [0, 0], sizes = [8, 32], strides = [1, 1]} : vector<8x128xbf16> to vector<8x32xbf16>
    %199 = vector.extract_strided_slice %192 {offsets = [0, 0], sizes = [8, 32], strides = [1, 1]} : vector<8x128xbf16> to vector<8x32xbf16>
    %200 = vector.extract_strided_slice %197 {offsets = [0, 0], sizes = [8, 32], strides = [1, 1]} : vector<8x128xbf16> to vector<8x32xbf16>
    "tpu.trace_start"() <{level = 10 : i32, message = "qd,kd->qk"}> : () -> ()
    %cst_59 = arith.constant dense<0.000000e+00> : vector<8x8xf32>
    %201 = tpu.matmul %198, %199, %cst_59 {dimension_numbers = #tpu.dot_dimension_numbers<[1], [1], [0], [0], [0, 0, 1, 0], [], []>} : vector<8x32xbf16>, vector<8x32xbf16>, vector<8x8xf32> -> vector<8x8xf32>
    "tpu.trace_stop"() : () -> ()
    %cst_60 = arith.constant 0.176776692 : f32
    %202 = vector.broadcast %cst_60 : f32 to vector<8x8xf32>
    %203 = arith.mulf %201, %202 : vector<8x8xf32>
    %204 = vector.broadcast %8 : vector<1x8xf32> to vector<8x8xf32>
    %205 = arith.addf %203, %204 : vector<8x8xf32>
    %cst_61 = arith.constant dense<0xFF800000> : vector<8xf32>
    %206 = vector.multi_reduction <maximumf>, %205, %cst_61 [1] : vector<8x8xf32> to vector<8xf32>
    %207 = vector.shape_cast %206 : vector<8xf32> to vector<8x1xf32>
    %208 = vector.broadcast %207 : vector<8x1xf32> to vector<8x8xf32>
    %209 = arith.subf %205, %208 : vector<8x8xf32>
    %210 = math.exp %209 : vector<8x8xf32>
    %cst_62 = arith.constant dense<0.000000e+00> : vector<8xf32>
    %211 = vector.multi_reduction <add>, %210, %cst_62 [1] : vector<8x8xf32> to vector<8xf32>
    %212 = vector.shape_cast %211 : vector<8xf32> to vector<8x1xf32>
    %213 = tpu.reciprocal %212 {approx = true} : vector<8x1xf32> -> vector<8x1xf32>
    %214 = vector.broadcast %213 : vector<8x1xf32> to vector<8x8xf32>
    %215 = arith.mulf %210, %214 : vector<8x8xf32>
    %216 = arith.truncf %215 : vector<8x8xf32> to vector<8x8xbf16>
    %cst_63 = arith.constant dense<0.000000e+00> : vector<8x32xf32>
    %217 = tpu.matmul %216, %200, %cst_63 {dimension_numbers = #tpu.dot_dimension_numbers<[1], [0], [0], [1], [0, 0, 1, 1], [], []>} : vector<8x8xbf16>, vector<8x32xbf16>, vector<8x32xf32> -> vector<8x32xf32>
    %218 = vector.extract_strided_slice %187 {offsets = [0, 32], sizes = [8, 32], strides = [1, 1]} : vector<8x128xbf16> to vector<8x32xbf16>
    %219 = vector.extract_strided_slice %192 {offsets = [0, 32], sizes = [8, 32], strides = [1, 1]} : vector<8x128xbf16> to vector<8x32xbf16>
    %220 = vector.extract_strided_slice %197 {offsets = [0, 32], sizes = [8, 32], strides = [1, 1]} : vector<8x128xbf16> to vector<8x32xbf16>
    "tpu.trace_start"() <{level = 10 : i32, message = "qd,kd->qk"}> : () -> ()
    %cst_64 = arith.constant dense<0.000000e+00> : vector<8x8xf32>
    %221 = tpu.matmul %218, %219, %cst_64 {dimension_numbers = #tpu.dot_dimension_numbers<[1], [1], [0], [0], [0, 0, 1, 0], [], []>} : vector<8x32xbf16>, vector<8x32xbf16>, vector<8x8xf32> -> vector<8x8xf32>
    "tpu.trace_stop"() : () -> ()
    %cst_65 = arith.constant 0.176776692 : f32
    %222 = vector.broadcast %cst_65 : f32 to vector<8x8xf32>
    %223 = arith.mulf %221, %222 : vector<8x8xf32>
    %224 = vector.broadcast %8 : vector<1x8xf32> to vector<8x8xf32>
    %225 = arith.addf %223, %224 : vector<8x8xf32>
    %cst_66 = arith.constant dense<0xFF800000> : vector<8xf32>
    %226 = vector.multi_reduction <maximumf>, %225, %cst_66 [1] : vector<8x8xf32> to vector<8xf32>
    %227 = vector.shape_cast %226 : vector<8xf32> to vector<8x1xf32>
    %228 = vector.broadcast %227 : vector<8x1xf32> to vector<8x8xf32>
    %229 = arith.subf %225, %228 : vector<8x8xf32>
    %230 = math.exp %229 : vector<8x8xf32>
    %cst_67 = arith.constant dense<0.000000e+00> : vector<8xf32>
    %231 = vector.multi_reduction <add>, %230, %cst_67 [1] : vector<8x8xf32> to vector<8xf32>
    %232 = vector.shape_cast %231 : vector<8xf32> to vector<8x1xf32>
    %233 = tpu.reciprocal %232 {approx = true} : vector<8x1xf32> -> vector<8x1xf32>
    %234 = vector.broadcast %233 : vector<8x1xf32> to vector<8x8xf32>
    %235 = arith.mulf %230, %234 : vector<8x8xf32>
    %236 = arith.truncf %235 : vector<8x8xf32> to vector<8x8xbf16>
    %cst_68 = arith.constant dense<0.000000e+00> : vector<8x32xf32>
    %237 = tpu.matmul %236, %220, %cst_68 {dimension_numbers = #tpu.dot_dimension_numbers<[1], [0], [0], [1], [0, 0, 1, 1], [], []>} : vector<8x8xbf16>, vector<8x32xbf16>, vector<8x32xf32> -> vector<8x32xf32>
    %238 = vector.extract_strided_slice %187 {offsets = [0, 64], sizes = [8, 32], strides = [1, 1]} : vector<8x128xbf16> to vector<8x32xbf16>
    %239 = vector.extract_strided_slice %192 {offsets = [0, 64], sizes = [8, 32], strides = [1, 1]} : vector<8x128xbf16> to vector<8x32xbf16>
    %240 = vector.extract_strided_slice %197 {offsets = [0, 64], sizes = [8, 32], strides = [1, 1]} : vector<8x128xbf16> to vector<8x32xbf16>
    "tpu.trace_start"() <{level = 10 : i32, message = "qd,kd->qk"}> : () -> ()
    %cst_69 = arith.constant dense<0.000000e+00> : vector<8x8xf32>
    %241 = tpu.matmul %238, %239, %cst_69 {dimension_numbers = #tpu.dot_dimension_numbers<[1], [1], [0], [0], [0, 0, 1, 0], [], []>} : vector<8x32xbf16>, vector<8x32xbf16>, vector<8x8xf32> -> vector<8x8xf32>
    "tpu.trace_stop"() : () -> ()
    %cst_70 = arith.constant 0.176776692 : f32
    %242 = vector.broadcast %cst_70 : f32 to vector<8x8xf32>
    %243 = arith.mulf %241, %242 : vector<8x8xf32>
    %244 = vector.broadcast %8 : vector<1x8xf32> to vector<8x8xf32>
    %245 = arith.addf %243, %244 : vector<8x8xf32>
    %cst_71 = arith.constant dense<0xFF800000> : vector<8xf32>
    %246 = vector.multi_reduction <maximumf>, %245, %cst_71 [1] : vector<8x8xf32> to vector<8xf32>
    %247 = vector.shape_cast %246 : vector<8xf32> to vector<8x1xf32>
    %248 = vector.broadcast %247 : vector<8x1xf32> to vector<8x8xf32>
    %249 = arith.subf %245, %248 : vector<8x8xf32>
    %250 = math.exp %249 : vector<8x8xf32>
    %cst_72 = arith.constant dense<0.000000e+00> : vector<8xf32>
    %251 = vector.multi_reduction <add>, %250, %cst_72 [1] : vector<8x8xf32> to vector<8xf32>
    %252 = vector.shape_cast %251 : vector<8xf32> to vector<8x1xf32>
    %253 = tpu.reciprocal %252 {approx = true} : vector<8x1xf32> -> vector<8x1xf32>
    %254 = vector.broadcast %253 : vector<8x1xf32> to vector<8x8xf32>
    %255 = arith.mulf %250, %254 : vector<8x8xf32>
    %256 = arith.truncf %255 : vector<8x8xf32> to vector<8x8xbf16>
    %cst_73 = arith.constant dense<0.000000e+00> : vector<8x32xf32>
    %257 = tpu.matmul %256, %240, %cst_73 {dimension_numbers = #tpu.dot_dimension_numbers<[1], [0], [0], [1], [0, 0, 1, 1], [], []>} : vector<8x8xbf16>, vector<8x32xbf16>, vector<8x32xf32> -> vector<8x32xf32>
    %258 = vector.extract_strided_slice %187 {offsets = [0, 96], sizes = [8, 32], strides = [1, 1]} : vector<8x128xbf16> to vector<8x32xbf16>
    %259 = vector.extract_strided_slice %192 {offsets = [0, 96], sizes = [8, 32], strides = [1, 1]} : vector<8x128xbf16> to vector<8x32xbf16>
    %260 = vector.extract_strided_slice %197 {offsets = [0, 96], sizes = [8, 32], strides = [1, 1]} : vector<8x128xbf16> to vector<8x32xbf16>
    "tpu.trace_start"() <{level = 10 : i32, message = "qd,kd->qk"}> : () -> ()
    %cst_74 = arith.constant dense<0.000000e+00> : vector<8x8xf32>
    %261 = tpu.matmul %258, %259, %cst_74 {dimension_numbers = #tpu.dot_dimension_numbers<[1], [1], [0], [0], [0, 0, 1, 0], [], []>} : vector<8x32xbf16>, vector<8x32xbf16>, vector<8x8xf32> -> vector<8x8xf32>
    "tpu.trace_stop"() : () -> ()
    %cst_75 = arith.constant 0.176776692 : f32
    %262 = vector.broadcast %cst_75 : f32 to vector<8x8xf32>
    %263 = arith.mulf %261, %262 : vector<8x8xf32>
    %264 = vector.broadcast %8 : vector<1x8xf32> to vector<8x8xf32>
    %265 = arith.addf %263, %264 : vector<8x8xf32>
    %cst_76 = arith.constant dense<0xFF800000> : vector<8xf32>
    %266 = vector.multi_reduction <maximumf>, %265, %cst_76 [1] : vector<8x8xf32> to vector<8xf32>
    %267 = vector.shape_cast %266 : vector<8xf32> to vector<8x1xf32>
    %268 = vector.broadcast %267 : vector<8x1xf32> to vector<8x8xf32>
    %269 = arith.subf %265, %268 : vector<8x8xf32>
    %270 = math.exp %269 : vector<8x8xf32>
    %cst_77 = arith.constant dense<0.000000e+00> : vector<8xf32>
    %271 = vector.multi_reduction <add>, %270, %cst_77 [1] : vector<8x8xf32> to vector<8xf32>
    %272 = vector.shape_cast %271 : vector<8xf32> to vector<8x1xf32>
    %273 = tpu.reciprocal %272 {approx = true} : vector<8x1xf32> -> vector<8x1xf32>
    %274 = vector.broadcast %273 : vector<8x1xf32> to vector<8x8xf32>
    %275 = arith.mulf %270, %274 : vector<8x8xf32>
    %276 = arith.truncf %275 : vector<8x8xf32> to vector<8x8xbf16>
    %cst_78 = arith.constant dense<0.000000e+00> : vector<8x32xf32>
    %277 = tpu.matmul %276, %260, %cst_78 {dimension_numbers = #tpu.dot_dimension_numbers<[1], [0], [0], [1], [0, 0, 1, 1], [], []>} : vector<8x8xbf16>, vector<8x32xbf16>, vector<8x32xf32> -> vector<8x32xf32>
    %278 = tpu.concatenate %217, %237, %257, %277 in 1 : vector<8x32xf32>, vector<8x32xf32>, vector<8x32xf32>, vector<8x32xf32> -> vector<8x128xf32>
    %279 = arith.truncf %278 : vector<8x128xf32> to vector<8x128xbf16>
    %cst_79 = arith.constant dense<0.000000e+00> : vector<8x128xf32>
    %280 = tpu.matmul %279, %172, %cst_79 {dimension_numbers = #tpu.dot_dimension_numbers<[1], [0], [0], [1], [0, 0, 1, 1], [], []>} : vector<8x128xbf16>, vector<128x128xbf16>, vector<8x128xf32> -> vector<8x128xf32>
    %281 = vector.shape_cast %180 : vector<128xf32> to vector<1x128xf32>
    %282 = vector.broadcast %281 : vector<1x128xf32> to vector<8x128xf32>
    %283 = arith.addf %280, %282 : vector<8x128xf32>
    %284 = arith.addf %283, %164 : vector<8x128xf32>
    %285 = vector.extract_strided_slice %18 {offsets = [11, 0], sizes = [1, 128], strides = [1, 1]} : vector<16x128xf32> to vector<1x128xf32>
    %286 = vector.shape_cast %285 : vector<1x128xf32> to vector<128xf32>
    %287 = vector.extract_strided_slice %18 {offsets = [12, 0], sizes = [1, 128], strides = [1, 1]} : vector<16x128xf32> to vector<1x128xf32>
    %288 = vector.shape_cast %287 : vector<1x128xf32> to vector<128xf32>
    %cst_80 = arith.constant dense<0.000000e+00> : vector<8xf32>
    %289 = vector.multi_reduction <add>, %284, %cst_80 [1] : vector<8x128xf32> to vector<8xf32>
    %290 = vector.shape_cast %289 : vector<8xf32> to vector<8x1xf32>
    %cst_81 = arith.constant 7.812500e-03 : f32
    %291 = vector.broadcast %cst_81 : f32 to vector<8x1xf32>
    %292 = arith.mulf %290, %291 : vector<8x1xf32>
    %293 = arith.mulf %284, %284 : vector<8x128xf32>
    %cst_82 = arith.constant dense<0.000000e+00> : vector<8xf32>
    %294 = vector.multi_reduction <add>, %293, %cst_82 [1] : vector<8x128xf32> to vector<8xf32>
    %295 = vector.shape_cast %294 : vector<8xf32> to vector<8x1xf32>
    %cst_83 = arith.constant 7.812500e-03 : f32
    %296 = vector.broadcast %cst_83 : f32 to vector<8x1xf32>
    %297 = arith.mulf %295, %296 : vector<8x1xf32>
    %298 = arith.mulf %292, %292 : vector<8x1xf32>
    %299 = arith.subf %297, %298 : vector<8x1xf32>
    %300 = vector.broadcast %292 : vector<8x1xf32> to vector<8x128xf32>
    %301 = arith.subf %284, %300 : vector<8x128xf32>
    %cst_84 = arith.constant 9.99999997E-7 : f32
    %302 = vector.broadcast %cst_84 : f32 to vector<8x1xf32>
    %303 = arith.addf %299, %302 : vector<8x1xf32>
    %304 = math.rsqrt %303 : vector<8x1xf32>
    %305 = vector.broadcast %304 : vector<8x1xf32> to vector<8x128xf32>
    %306 = arith.mulf %301, %305 : vector<8x128xf32>
    %307 = vector.shape_cast %286 : vector<128xf32> to vector<1x128xf32>
    %308 = vector.broadcast %307 : vector<1x128xf32> to vector<8x128xf32>
    %309 = arith.mulf %306, %308 : vector<8x128xf32>
    %310 = vector.shape_cast %288 : vector<128xf32> to vector<1x128xf32>
    %311 = vector.broadcast %310 : vector<1x128xf32> to vector<8x128xf32>
    %312 = arith.addf %309, %311 : vector<8x128xf32>
    %313 = arith.truncf %312 : vector<8x128xf32> to vector<8x128xbf16>
    %cst_85 = arith.constant dense<0.000000e+00> : vector<8x256xf32>
    %314 = tpu.matmul %313, %14, %cst_85 {dimension_numbers = #tpu.dot_dimension_numbers<[1], [0], [0], [1], [0, 0, 1, 1], [], []>} : vector<8x128xbf16>, vector<128x256xbf16>, vector<8x256xf32> -> vector<8x256xf32>
    %315 = vector.broadcast %20 : vector<1x256xf32> to vector<8x256xf32>
    %316 = arith.addf %314, %315 : vector<8x256xf32>
    %cst_86 = arith.constant 0.000000e+00 : f32
    %317 = vector.broadcast %cst_86 : f32 to vector<8x256xf32>
    %318 = arith.maximumf %316, %317 : vector<8x256xf32>
    %319 = arith.truncf %318 : vector<8x256xf32> to vector<8x256xbf16>
    %cst_87 = arith.constant dense<0.000000e+00> : vector<8x128xf32>
    %320 = tpu.matmul %319, %16, %cst_87 {dimension_numbers = #tpu.dot_dimension_numbers<[1], [0], [0], [1], [0, 0, 1, 1], [], []>} : vector<8x256xbf16>, vector<256x128xbf16>, vector<8x128xf32> -> vector<8x128xf32>
    %321 = vector.extract_strided_slice %18 {offsets = [8, 0], sizes = [1, 128], strides = [1, 1]} : vector<16x128xf32> to vector<1x128xf32>
    %322 = vector.shape_cast %321 : vector<1x128xf32> to vector<128xf32>
    %323 = vector.shape_cast %322 : vector<128xf32> to vector<1x128xf32>
    %324 = vector.broadcast %323 : vector<1x128xf32> to vector<8x128xf32>
    %325 = arith.addf %320, %324 : vector<8x128xf32>
    %326 = arith.addf %325, %312 : vector<8x128xf32>
    %327 = vector.extract_strided_slice %18 {offsets = [13, 0], sizes = [1, 128], strides = [1, 1]} : vector<16x128xf32> to vector<1x128xf32>
    %328 = vector.shape_cast %327 : vector<1x128xf32> to vector<128xf32>
    %329 = vector.extract_strided_slice %18 {offsets = [14, 0], sizes = [1, 128], strides = [1, 1]} : vector<16x128xf32> to vector<1x128xf32>
    %330 = vector.shape_cast %329 : vector<1x128xf32> to vector<128xf32>
    %cst_88 = arith.constant dense<0.000000e+00> : vector<8xf32>
    %331 = vector.multi_reduction <add>, %326, %cst_88 [1] : vector<8x128xf32> to vector<8xf32>
    %332 = vector.shape_cast %331 : vector<8xf32> to vector<8x1xf32>
    %cst_89 = arith.constant 7.812500e-03 : f32
    %333 = vector.broadcast %cst_89 : f32 to vector<8x1xf32>
    %334 = arith.mulf %332, %333 : vector<8x1xf32>
    %335 = arith.mulf %326, %326 : vector<8x128xf32>
    %cst_90 = arith.constant dense<0.000000e+00> : vector<8xf32>
    %336 = vector.multi_reduction <add>, %335, %cst_90 [1] : vector<8x128xf32> to vector<8xf32>
    %337 = vector.shape_cast %336 : vector<8xf32> to vector<8x1xf32>
    %cst_91 = arith.constant 7.812500e-03 : f32
    %338 = vector.broadcast %cst_91 : f32 to vector<8x1xf32>
    %339 = arith.mulf %337, %338 : vector<8x1xf32>
    %340 = arith.mulf %334, %334 : vector<8x1xf32>
    %341 = arith.subf %339, %340 : vector<8x1xf32>
    %342 = vector.broadcast %334 : vector<8x1xf32> to vector<8x128xf32>
    %343 = arith.subf %326, %342 : vector<8x128xf32>
    %cst_92 = arith.constant 9.99999997E-7 : f32
    %344 = vector.broadcast %cst_92 : f32 to vector<8x1xf32>
    %345 = arith.addf %341, %344 : vector<8x1xf32>
    %346 = math.rsqrt %345 : vector<8x1xf32>
    %347 = vector.broadcast %346 : vector<8x1xf32> to vector<8x128xf32>
    %348 = arith.mulf %343, %347 : vector<8x128xf32>
    %349 = vector.shape_cast %328 : vector<128xf32> to vector<1x128xf32>
    %350 = vector.broadcast %349 : vector<1x128xf32> to vector<8x128xf32>
    %351 = arith.mulf %348, %350 : vector<8x128xf32>
    %352 = vector.shape_cast %330 : vector<128xf32> to vector<1x128xf32>
    %353 = vector.broadcast %352 : vector<1x128xf32> to vector<8x128xf32>
    %354 = arith.addf %351, %353 : vector<8x128xf32>
    %c0_93 = arith.constant 0 : index
    %c0_94 = arith.constant 0 : index
    %c0_95 = arith.constant 0 : index
    %355 = vector.load %arg11[%c0_93, %c0_94, %c0_95] : memref<1x8x128xf32, #tpu.memory_space<vmem>>, vector<1x8x128xf32>
    %356 = vector.shape_cast %355 : vector<1x8x128xf32> to vector<8x128xf32>
    %357 = vector.shape_cast %354 : vector<8x128xf32> to vector<1x8x128xf32>
    tpu.vector_store %arg11[%c0_93, %c0_94, %c0_95], %357 {strides = array<i32>} : memref<1x8x128xf32, #tpu.memory_space<vmem>>, vector<1x8x128xf32>,
    return
  }
  func.func @transform_0(%arg0: i32, %arg1: i32) -> (i32, i32, i32) {
    %c0_i32 = arith.constant 0 : i32
    %c0_i32_0 = arith.constant 0 : i32
    %c0_i32_1 = arith.constant 0 : i32
    return %arg0, %c0_i32, %c0_i32_0 : i32, i32, i32
  }
  func.func @transform_1(%arg0: i32, %arg1: i32) -> (i32, i32, i32) {
    %c0_i32 = arith.constant 0 : i32
    %c0_i32_0 = arith.constant 0 : i32
    %c0_i32_1 = arith.constant 0 : i32
    return %arg0, %c0_i32, %c0_i32_0 : i32, i32, i32
  }
  func.func @transform_2(%arg0: i32, %arg1: i32) -> (i32, i32, i32) {
    %c0_i32 = arith.constant 0 : i32
    %c0_i32_0 = arith.constant 0 : i32
    %c0_i32_1 = arith.constant 0 : i32
    return %arg0, %c0_i32, %c0_i32_0 : i32, i32, i32
  }
  func.func @transform_3(%arg0: i32, %arg1: i32) -> (i32, i32, i32) {
    %c0_i32 = arith.constant 0 : i32
    %c0_i32_0 = arith.constant 0 : i32
    %c0_i32_1 = arith.constant 0 : i32
    return %arg0, %c0_i32, %c0_i32_0 : i32, i32, i32
  }
  func.func @transform_4(%arg0: i32, %arg1: i32) -> (i32, i32, i32, i32) {
    %c0_i32 = arith.constant 0 : i32
    %c0_i32_0 = arith.constant 0 : i32
    %c0_i32_1 = arith.constant 0 : i32
    %c0_i32_2 = arith.constant 0 : i32
    return %arg1, %c0_i32, %c0_i32_0, %c0_i32_1 : i32, i32, i32, i32
  }
  func.func @transform_5(%arg0: i32, %arg1: i32) -> (i32, i32, i32) {
    %c0_i32 = arith.constant 0 : i32
    %c0_i32_0 = arith.constant 0 : i32
    %c0_i32_1 = arith.constant 0 : i32
    return %arg1, %c0_i32, %c0_i32_0 : i32, i32, i32
  }
  func.func @transform_6(%arg0: i32, %arg1: i32) -> (i32, i32, i32) {
    %c0_i32 = arith.constant 0 : i32
    %c0_i32_0 = arith.constant 0 : i32
    %c0_i32_1 = arith.constant 0 : i32
    return %arg1, %c0_i32, %c0_i32_0 : i32, i32, i32
  }
  func.func @transform_7(%arg0: i32, %arg1: i32) -> (i32, i32, i32) {
    %c0_i32 = arith.constant 0 : i32
    %c0_i32_0 = arith.constant 0 : i32
    %c0_i32_1 = arith.constant 0 : i32
    return %arg1, %c0_i32, %c0_i32_0 : i32, i32, i32
  }
  func.func @transform_8(%arg0: i32, %arg1: i32) -> (i32, i32, i32) {
    %c0_i32 = arith.constant 0 : i32
    %c0_i32_0 = arith.constant 0 : i32
    %c0_i32_1 = arith.constant 0 : i32
    return %arg1, %c0_i32, %c0_i32_0 : i32, i32, i32
  }
  func.func @transform_9(%arg0: i32, %arg1: i32) -> (i32, i32, i32) {
    %c0_i32 = arith.constant 0 : i32
    %c0_i32_0 = arith.constant 0 : i32
    %c0_i32_1 = arith.constant 0 : i32
    return %arg0, %c0_i32, %c0_i32_0 : i32, i32, i32
  }
}

</mosaic_0001>

<bundles_post_ra>
// kernel: tpu_custom_call.1
= control target key start
LH: loop header
LB: loop body
LE: loop exit
PB: predicated region body
PF: predicated region fallthrough
CT: control target
= control target key end

     0   :  { %s5114_s0 = inlined_call_operand.hbm [shape: f32[2,8,128], index: 0, kind: input, shape index: {}]   ;;  %s5115_s1 = inlined_call_operand.hbm [shape: f32[2,8,128], index: 1, kind: input, shape index: {}]   ;;  %s5116_s2 = inlined_call_operand.vmem [shape: f32[2,1,8], index: 2, kind: input, shape index: {}]   ;;  %s5117_s3 = inlined_call_operand.hbm [shape: f32[2,8,8], index: 3, kind: input, shape index: {}]   ;;  %s5118_s4 = inlined_call_operand.hbm [shape: bf16[2,8,128,128], index: 4, kind: input, shape index: {}]   ;;  %s5119_s5 = inlined_call_operand.hbm [shape: bf16[2,128,256], index: 5, kind: input, shape index: {}]   ;;  %s5120_s6 = inlined_call_operand.hbm [shape: bf16[2,256,128], index: 6, kind: input, shape index: {}]   ;;  %s5121_s7 = inlined_call_operand.hbm [shape: f32[2,16,128], index: 7, kind: input, shape index: {}]   ;;  %s5122_s8 = inlined_call_operand.vmem [shape: f32[2,1,256], index: 8, kind: input, shape index: {}]   ;;  %s5123_s9 = inlined_call_operand.hbm [shape: f32[2,8,128], index: 9, kind: output, shape index: {}]  }
   0x1   :  { %5151 = sst [smem:[#allocation38_spill]] %s5115_s1 }
   0x2   :  { %5152 = sst [smem:[#allocation39_spill]] %s5116_s2 }
   0x3   :  { %5153 = sst [smem:[#allocation40_spill]] %s5118_s4 }
   0x4   :  { %5154 = sst [smem:[#allocation41_spill]] %s5121_s7 }
   0x5   :  { %5155 = sst [smem:[#allocation42_spill]] %s5122_s8 }
   0x6   :  { %5156 = sst [smem:[#allocation43_spill]] %s5123_s9 }
   0x7   :  { %14 = vsyncpa [#allocation3], 0 }
   0x8   :  { %16 = vsyncpa [#allocation3 + $0x1], 0 }
   0x9   :  { %17 = vsyncpa [#allocation6], 0 }
   0xa   :  { %19 = vsyncpa [#allocation6 + $0x1], 0 }
   0xb   :  { %20 = vsyncpa [#allocation9], 0 }
   0xc   :  { %22 = vsyncpa [#allocation9 + $0x1], 0 }
   0xd   :  { %23 = vsyncpa [#allocation12], 0 }
   0xe   :  { %25 = vsyncpa [#allocation12 + $0x1], 0 }
   0xf   :  { %26 = vsyncpa [#allocation4], 0 }
  0x10   :  { %28 = vsyncpa [#allocation4 + $0x1], 0  ;;  %s4298_s30 = smov 0   ;;  %s4300_s10 = smov 0  }
  0x11   :  { %s4302_s11 = smov 0   ;;  %s4304_s12 = smov 0  }
  0x12   :  { %s4306_s13 = smov 0   ;;  %s4308_s14 = smov 0  }
  0x13   :  { %s4310_s15 = smov 0   ;;  %s4312_s16 = smov 0  }
  0x14   :  { %s4314_s17 = smov 0   ;;  %s4316_s18 = smov 0  }
  0x15   :  { %s4318_s19 = smov 0  }
  0x16 LB: > { %5157 = sst [smem:[#allocation20_spill]] %s4192_s10  ;;  %s4354_s20 = sadd.s32 4294967295, %s4228_s19   ;;  %s4228_s19 = sphi %s4318_s19, %s34_s19   ;;  %s4224_s18 = sphi %s4316_s18, %s5219_s18   ;;  %s4220_s17 = sphi %s4314_s17, %s5223_s17   ;;  %s4216_s16 = sphi %s4312_s16, %s5217_s16   ;;  %s4212_s15 = sphi %s4310_s15, %s5222_s15   ;;  %s4208_s14 = sphi %s4308_s14, %s5221_s14   ;;  %s4204_s13 = sphi %s4306_s13, %s5220_s13   ;;  %s4200_s12 = sphi %s4304_s12, %s5215_s12   ;;  %s4196_s11 = sphi %s4302_s11, %s5214_s11   ;;  %s4192_s10 = sphi %s4300_s10, %s5213_s10   ;;  %s4188_s30 = sphi %s4298_s30, %s5212_s30  }
  0x17   : > { %5158 = sst [smem:[#allocation21_spill]] %s4196_s11  ;;  %s3080_s21 = sadd.s32 4294967294, %s4228_s19  }
  0x18   : > { %5159 = sst [smem:[#allocation22_spill]] %s4200_s12  ;;  %s43_s22 = sadd.s32 1, %s4220_s17 }
  0x19   : > { %5160 = sst [smem:[#allocation23_spill]] %s4204_s13  ;;  %s46_s23 = sadd.s32 1, %s4224_s18 }
  0x1a   : > { %5161 = sst [smem:[#allocation24_spill]] %s4212_s15  ;;  %p44_p0 = scmp.ge.s32.totalorder %s43_s22, 2 }
  0x1b   : > { %5162 = sst [smem:[#allocation25_spill]] %s4216_s16  ;;  %s53_s24 = sadd.s32 1, %s4208_s14 }
  0x1c   : > { %5163 = sst [smem:[#allocation26_spill]] %s4224_s18  ;;  %p60_p1 = scmp.ne.s32.totalorder %s4208_s14, %s4204_s13 }
  0x1d   : > { %5164 = sst [smem:[#allocation27_spill]] %s4228_s19  ;;  %p61_p2 = scmp.eq.s32.totalorder %s4228_s19, 0 }
  0x1e   : > { %5165 = sst [smem:[#allocation28_spill]] %s4354_s20  ;;  %s5225_s22 = smov (%p44_p0, %s43_s22), 0 }
  0x1f   : > { %5166 = sst [smem:[#allocation29_spill]] %s5225_s22  ;;  %s5227_s23 = smov (!%p44_p0, %s46_s23), %s4224_s18 }
  0x20   : > { %p4371_p3 = por %p61_p2, %p60_p1  ;;  %p5126_p4 = scmp.ne.s32.totalorder %s4204_s13, %s4200_s12 }
  0x21   : > { %p48_p5 = scmp.ge.s32.totalorder %s5227_s23, 2  ;;  %p67_p6 = scmp.eq.s32.totalorder %s4354_s20, 0 }
  0x22   : > { %s154_s26 = ssub.s32 %s4220_s17, %s5225_s22  ;;  %s157_s27 = sadd.s32 1, %s4196_s11 }
  0x23   : > { %s5229_s23 = smov (%p48_p5, %s5227_s23), 0  ;;  %p4388_p7 = por %p67_p6, %p5126_p4 }
  0x24   : > { %5168 = sst [smem:[#allocation30_spill]] %s5229_s23  ;;  %p155_p8 = scmp.eq.s32.totalorder %s154_s26, 0 }
  0x25   : > { %s5169_s28 = scalar_select %p4388_p7, 1, 0 }
  0x26   : > { %s50_s29 = ssub.s32 %s4224_s18, %s5229_s23  ;;  %p164_p9 = scmp.ne.s32.totalorder %s4196_s11, %s4192_s10 }
  0x27   : > { %5170 = sst [smem:[#allocation31_spill]] %s5169_s28  ;;  %p51_p10 = scmp.eq.s32.totalorder %s50_s29, 0 }
  0x28   : > { %p170_p11 = scmp.ne.s32.totalorder %s4192_s10, %s4188_s30  ;;  %p4406_p12 = por %p164_p9, %p61_p2 }
  0x29   : > { %s4399_s22 = scalar_select %p155_p8, %s4196_s11, %s157_s27  }
  0x2a   : > { %s4402_s9 = scalar_select %p51_p10, %s4208_s14, %s53_s24  }
  0x2b   : > { %5171 = sst [smem:[#allocation32_spill]] %s4399_s22  ;;  %p4412_p13 = por %p170_p11, %p67_p6 }
  0x2c   : > { %5172 = sst [smem:[#allocation33_spill]] %s4402_s9  ;;  %p298_p0 = scmp.eq.s32.totalorder %s4354_s20, 3 }
  0x2d   : > { %s5174_s26 = scalar_select %p4412_p13, 1, 0 }
  0x2e   : > { %p304_p5 = scmp.eq.s32.totalorder %s3080_s21, 3  ;;  %p3657_p4 = scmp.lt.s32.totalorder %s4228_s19, 4 }
  0x2f   : > { %5175 = sst [smem:[#allocation34_spill]] %s5174_s26  ;;  %p4421_p7 = por %p298_p0, %p60_p1 }
  0x30   : > { %p5178_p8 = scmp.ne.s32.totalorder %s4204_s13, %s4200_s12  ;;  %s5134_s27 = sand.u32 1, %s4208_s14  }
  0x31   : > { %s5176_s30 = scalar_select %p4421_p7, 1, 0 }
  0x32   : > { %p4428_p10 = por %p304_p5, %p5178_p8  ;;  %s4434_s29 = sshll.u32 %s4224_s18, 7 }
  0x33   : > { %5177 = sst [smem:[#allocation35_spill]] %s5176_s30  ;;  %s4438_s23 = sshll.u32 %s5134_s27, 3 }
  0x34   : > { %s5179_s24 = scalar_select %p4428_p10, 1, 0 }
  0x35   : > { %p4444_p2 = pnand %p3657_p4, %p4371_p3  ;;  %s4449_s9 = sand.u32 1, %s4228_s19  }
  0x36   : > { %5180 = sst [smem:[#allocation36_spill]] %s5179_s24  ;;  %s346_s12 = scalar_lea.vmem [#allocation5], %s4438_s23 }
  0x37   : > { %s5182_s1 = sld [smem:[#allocation38_spill]]  ;;  %s353_s30 = sshll.u32 %s346_s12, 4  ;;  %s354_s30 = int_to_ptr.vmem [resolvable:$true] %s353_s30 }
  0x38   : > { %s5137_s27 = scalar_lea.sflag [#allocation6], %s4449_s9  ;;  %p5144_p1 = pneg %p4444_p2 }
  0x39   : > { %s3913_s25 = scalar_lea.vmem %s354_s30, 128  ;;  %s4230_s2 = smov [#allocation5]  }
  0x3a   : > { %p3914_p3 = scmp.ne.s32.totalorder %s354_s30, %s3913_s25  ;;  %s3918_s15 = sshll.u32 %s4230_s2, 4  ;;  %s3919_s15 = int_to_ptr.vmem [resolvable:$false] %s3918_s15 }
  0x3b   : > { %s3920_s16 = scalar_lea.vmem %s3919_s15, 256  ;;  %p3921_p11 = scmp.lt.s32.totalorder %s354_s30, %s3919_s15 }
  0x3c   : > { %p3916_p6 = pnand %p3914_p3, %p5144_p1  ;;  %p3922_p0 = scmp.lt.s32.totalorder %s3920_s16, %s3913_s25 }
  0x3d   : > { %s351_s18 = scalar_lea.hbm %s5182_s1, %s4434_s29 }
  0x3e   : > { %p3917_p9 = pneg %p3916_p6  ;;  %p3923_p5 = por %p3922_p0, %p3921_p11 }
  0x40   : > { %p3924_p8 = pnand %p3923_p5, %p3917_p9 }
  0x42   : > { %3927 = shalt.err (!%p3924_p8)
}
  0x43   : > { %3637 = dma.hbm_to_vmem [thread:$0]  (!%p4444_p2), %s351_s18, 128, %s354_s30, %s5137_s27  }
  0x44   : > { %p4470_p3 = pnand %p3657_p4, %p4406_p12  ;;  %p3101_p6 = scmp.ge.s32.totalorder %s4228_s19, 1 }
  0x45   : > { %p473_p9 = scmp.lt.s32.totalorder %s4228_s19, 5  ;;  %s4477_s12 = sand.u32 1, %s4196_s11  }
  0x46   : > { %s3089_s16 = sshll.u32 %s4477_s12, 9  ;;  %s3229_s18 = sshll.u32 %s4220_s17, 13 }
  0x47   : > { %p4479_p11 = pnand %p3101_p6, %p473_p9  ;;  %s5186_s4 = sld [smem:[#allocation40_spill]] }
  0x48   : > { %s388_s24 = scalar_lea.vmem [#allocation8], %s3089_s16  ;;  %s3092_s27 = sshll.u32 %s4477_s12, 7 }
  0x49   : > { %s5184_s15 = scalar_select %p4479_p11, 1, 0 }
  0x4a   : > { %s395_s25 = sshll.u32 %s388_s24, 4  ;;  %s385_s1 = scalar_lea.sflag [#allocation9], %s4449_s9  ;;  %s396_s25 = int_to_ptr.vmem [resolvable:$true] %s395_s25 }
  0x4b   : > { %5185 = sst [smem:[#allocation37_spill]] %s5184_s15  ;;  %p5150_p4 = pneg %p4470_p3 }
  0x4c   : > { %s3941_s11 = scalar_lea.vmem %s396_s25, 8192  ;;  %s4231_s19 = smov [#allocation8]  }
  0x4d   : > { %s394_s30 = scalar_lea.hbm %s5186_s4, %s3229_s18  ;;  %p3942_p12 = scmp.ne.s32.totalorder %s396_s25, %s3941_s11 }
  0x4e   : > { %s3946_s26 = sshll.u32 %s4231_s19, 4  ;;  %s3947_s26 = int_to_ptr.vmem [resolvable:$false] %s3946_s26 }
  0x4f   : > { %p3944_p0 = pnand %p3942_p12, %p5150_p4  ;;  %s3948_s10 = scalar_lea.vmem %s3947_s26, 16384 }
  0x50   : > { %p3949_p8 = scmp.lt.s32.totalorder %s396_s25, %s3947_s26  ;;  %p3950_p6 = scmp.lt.s32.totalorder %s3948_s10, %s3941_s11 }
  0x51   : > { %p3945_p5 = pneg %p3944_p0 }
  0x52   : > { %p3951_p9 = por %p3950_p6, %p3949_p8 }
  0x54   : > { %p3952_p1 = pnand %p3951_p9, %p3945_p5 }
  0x56   : > { %3955 = shalt.err (!%p3952_p1)
}
  0x57   : > { %s4232_s16 = smov 64   ;;  %s4233_s18 = smov 4  }
  0x58   : > { %3643 = dma.hbm_to_vmem [thread:$0]  (!%p4470_p3), %s394_s30, 8192, %s396_s25, %s385_s1, %s4232_s16, %s4232_s16, %s4233_s18  }
  0x59   : > { %s3230_s19 = sshll.u32 %s4220_s17, 11  ;;  %s409_s11 = scalar_lea.vmem [#allocation10], %s3092_s27 }
  0x5a   : > { %s4506_s10 = scalar_lea.hbm %s5119_s5, %s3230_s19  ;;  %s416_s22 = sshll.u32 %s409_s11, 4  ;;  %s4508_s22 = int_to_ptr.vmem [resolvable:$true] %s416_s22 }
  0x5b   : > { %s436_s20 = scalar_lea.hbm %s5120_s6, %s3230_s19  ;;  %s430_s28 = scalar_lea.vmem [#allocation11], %s3092_s27 }
  0x5c   : > { %s437_s13 = sshll.u32 %s430_s28, 4  ;;  %s427_s15 = scalar_lea.sflag [#allocation12], %s4449_s9  ;;  %s438_s13 = int_to_ptr.vmem [resolvable:$true] %s437_s13 }
  0x5d   : > { %s3969_s7 = scalar_lea.vmem %s438_s13, 2048  ;;  %s4234_s30 = smov [#allocation11]  }
  0x5e   : > { %p3970_p1 = scmp.ne.s32.totalorder %s438_s13, %s3969_s7  ;;  %s3974_s25 = sshll.u32 %s4234_s30, 4  ;;  %s3975_s25 = int_to_ptr.vmem [resolvable:$false] %s3974_s25 }
  0x5f   : > { %s3976_s8 = scalar_lea.vmem %s3975_s25, 4096  ;;  %p3977_p5 = scmp.lt.s32.totalorder %s438_s13, %s3975_s25 }
  0x60   : > { %p3972_p12 = pnand %p3970_p1, %p5150_p4  ;;  %p3978_p8 = scmp.lt.s32.totalorder %s3976_s8, %s3969_s7 }
  0x62   : > { %p3973_p0 = pneg %p3972_p12  ;;  %p3979_p6 = por %p3978_p8, %p3977_p5 }
  0x64   : > { %p3980_p9 = pnand %p3979_p6, %p3973_p0 }
  0x66   : > { %3983 = shalt.err (!%p3980_p9)
}
  0x67   : > { %3649 = dma.hbm_to_vmem [thread:$0]  (!%p4470_p3), %s436_s20, 2048, %s438_s13, %s427_s15, %s4232_s16, %s4232_s16, %s4233_s18  }
  0x68   : > { %s333_s7 = scalar_lea.hbm %s5114_s0, %s4434_s29  ;;  %s328_s27 = scalar_lea.vmem [#allocation2], %s4438_s23 }
  0x69   : > { %s335_s19 = sshll.u32 %s328_s27, 4  ;;  %s375_s24 = scalar_lea.hbm %s5117_s3, %s4434_s29  ;;  %s336_s19 = int_to_ptr.vmem [resolvable:$true] %s335_s19 }
  0x6a   : > { %s5187_s30 = sand.u32 1, %s4208_s14   ;;  %s3997_s8 = scalar_lea.vmem %s336_s19, 128 }
  0x6b   : > { %s325_s25 = scalar_lea.sflag [#allocation3], %s5187_s30  ;;  %p3998_p1 = scmp.ne.s32.totalorder %s336_s19, %s3997_s8 }
  0x6c   : > { %p5188_p12 = pneg %p4444_p2  ;;  %s4235_s13 = smov [#allocation2]  }
  0x6d   : > { %s4002_s20 = sshll.u32 %s4235_s13, 4  ;;  %s4003_s20 = int_to_ptr.vmem [resolvable:$false] %s4002_s20 }
  0x6e   : > { %p4000_p0 = pnand %p3998_p1, %p5188_p12  ;;  %s4004_s16 = scalar_lea.vmem %s4003_s20, 256 }
  0x6f   : > { %p4005_p8 = scmp.lt.s32.totalorder %s336_s19, %s4003_s20  ;;  %p4006_p6 = scmp.lt.s32.totalorder %s4004_s16, %s3997_s8 }
  0x70   : > { %p4001_p5 = pneg %p4000_p0 }
  0x71   : > { %p4007_p9 = por %p4006_p6, %p4005_p8 }
  0x73   : > { %p4008_p4 = pnand %p4007_p9, %p4001_p5 }
  0x75   : > { %4011 = shalt.err (!%p4008_p4)
}
  0x76   : > { %3634 = dma.hbm_to_vmem [thread:$0]  (!%p4444_p2), %s333_s7, 128, %s336_s19, %s325_s25  }
  0x77   : > { %s370_s18 = scalar_lea.vmem [#allocation7], %s4438_s23  ;;  %s4236_s27 = smov [#allocation7]  }
  0x78   : > { %s377_s4 = sshll.u32 %s370_s18, 4  ;;  %s4030_s26 = sshll.u32 %s4236_s27, 4  ;;  %s378_s4 = int_to_ptr.vmem [resolvable:$true] %s377_s4  ;;  %s4031_s26 = int_to_ptr.vmem [resolvable:$false] %s4030_s26 }
  0x79   : > { %s4025_s28 = scalar_lea.vmem %s378_s4, 128  ;;  %s4032_s11 = scalar_lea.vmem %s4031_s26, 256 }
  0x7a   : > { %p4026_p1 = scmp.ne.s32.totalorder %s378_s4, %s4025_s28  ;;  %p4033_p5 = scmp.lt.s32.totalorder %s378_s4, %s4031_s26 }
  0x7b   : > { %p4034_p4 = scmp.lt.s32.totalorder %s4032_s11, %s4025_s28 }
  0x7c   : > { %p4028_p0 = pnand %p4026_p1, %p5188_p12 }
  0x7d   : > { %p4035_p8 = por %p4034_p4, %p4033_p5 }
  0x7e   : > { %p4029_p10 = pneg %p4028_p0 }
  0x80   : > { %p4036_p6 = pnand %p4035_p8, %p4029_p10 }
  0x82   : > { %4039 = shalt.err (!%p4036_p6)
}
  0x83   : > { %s5189_s23 = scalar_lea.sflag [#allocation6], %s4449_s9  ;;  %s4053_s30 = scalar_lea.vmem %s4508_s22, 2048 }
  0x84   : > { %3640 = dma.hbm_to_vmem [thread:$0]  (!%p4444_p2), %s375_s24, 128, %s378_s4, %s5189_s23  }
  0x85   : > { %p4054_p9 = scmp.ne.s32.totalorder %s4508_s22, %s4053_s30  ;;  %p5190_p1 = pneg %p4470_p3 }
  0x86   : > { %s4237_s25 = smov [#allocation10]  }
  0x87   : > { %p4056_p10 = pnand %p4054_p9, %p5190_p1  ;;  %s4058_s21 = sshll.u32 %s4237_s25, 4  ;;  %s4059_s21 = int_to_ptr.vmem [resolvable:$false] %s4058_s21 }
  0x88   : > { %s4060_s8 = scalar_lea.vmem %s4059_s21, 4096  ;;  %p4061_p0 = scmp.lt.s32.totalorder %s4508_s22, %s4059_s21 }
  0x89   : > { %p4057_p12 = pneg %p4056_p10  ;;  %p4062_p5 = scmp.lt.s32.totalorder %s4060_s8, %s4053_s30 }
  0x8b   : > { %p4063_p4 = por %p4062_p5, %p4061_p0 }
  0x8d   : > { %p4064_p8 = pnand %p4063_p4, %p4057_p12 }
  0x8f   : > { %4067 = shalt.err (!%p4064_p8)
}
  0x90   : > { %s4238_s29 = smov 128   ;;  %s4239_s24 = smov 8  }
  0x91   : > { %3646 = dma.hbm_to_vmem [thread:$0]  (!%p4470_p3), %s4506_s10, 2048, %s4508_s22, %s385_s1, %s4238_s29, %s4238_s29, %s4239_s24  }
  0x92   : > { %s3098_s13 = sshll.u32 %s4477_s12, 4  ;;  %s3232_s20 = sshll.u32 %s4220_s17, 8 }
  0x93   : > { %s5191_s4 = sld [smem:[#allocation41_spill]]  ;;  %s451_s27 = scalar_lea.vmem [#allocation13], %s3098_s13 }
  0x94   : > { %s458_s26 = sshll.u32 %s451_s27, 4  ;;  %p5192_p6 = pmov %p5190_p1  ;;  %s459_s26 = int_to_ptr.vmem [resolvable:$true] %s458_s26 }
  0x95   : > { %s4081_s11 = scalar_lea.vmem %s459_s26, 256  ;;  %s4240_s23 = smov [#allocation13]  }
  0x96   : > { %p4082_p2 = scmp.ne.s32.totalorder %s459_s26, %s4081_s11  ;;  %s4086_s7 = sshll.u32 %s4240_s23, 4  ;;  %s4087_s7 = int_to_ptr.vmem [resolvable:$false] %s4086_s7 }
  0x97   : > { %s4088_s19 = scalar_lea.vmem %s4087_s7, 512  ;;  %p4089_p10 = scmp.lt.s32.totalorder %s459_s26, %s4087_s7 }
  0x98   : > { %p4084_p9 = pnand %p4082_p2, %p5192_p6  ;;  %p4090_p12 = scmp.lt.s32.totalorder %s4088_s19, %s4081_s11 }
  0x99   : > { %s457_s28 = scalar_lea.hbm %s5191_s4, %s3232_s20 }
  0x9a   : > { %p4085_p1 = pneg %p4084_p9  ;;  %p4091_p0 = por %p4090_p12, %p4089_p10 }
  0x9c   : > { %p4092_p5 = pnand %p4091_p0, %p4085_p1 }
  0x9e   : > { %4095 = shalt.err (!%p4092_p5)
}
  0x9f   : > { %3652 = dma.hbm_to_vmem [thread:$0]  (!%p4470_p3), %s457_s28, 256, %s459_s26, %s427_s15, %s4238_s29, %s4238_s29, %s4239_s24  }
  0xa0   : > { %477 = sbr.rel (%p4479_p11) target bundleno = 5326 (0x14ce), region = 56  ;;  %s5194_s12 = sld [smem:[#allocation23_spill]] (!%p4479_p11) }
  0xa1   : > { %s5195_s10 = sld [smem:[#allocation31_spill]] (!%p4479_p11) }
  0xa6   : > { %s4580_s22 = sand.u32 1, %s5194_s12  }
  0xa7   : > { %s4583_s30 = sshll.u32 %s4580_s22, 3  ;;  %s480_s25 = scalar_lea.sflag [#allocation3], %s4580_s22 }
  0xa8   : > { %s483_s21 = scalar_lea.vmem [#allocation2], %s4583_s30  ;;  %p5196_p4 = scmp.ne.s32.totalorder %s5195_s10, 0 }
  0xaa   : > { %4167 = dma.done.wait (%p5196_p4), %s480_s25, 128  }
  0xab   : > { %4169 = vsyncadd (%p5196_p4), %s480_s25, 4294967168  ;;  %s5197_s9 = sld [smem:[#allocation28_spill]]  ;;  %s492_s8 = scalar_lea.vmem [#allocation5], %s4583_s30 }
  0xb1   : > { %s488_s2 = sand.u32 1, %s5197_s9  }
  0xb2   : > { %s489_s15 = scalar_lea.sflag [#allocation6], %s488_s2 }
  0xb3   : > { %4171 = dma.done.wait (%p5196_p4), %s489_s15, 256  }
  0xb4   : > { %4173 = vsyncadd (%p5196_p4), %s489_s15, 4294967040  ;;  %s5198_s29 = sld [smem:[#allocation20_spill]]  ;;  %s501_s16 = scalar_lea.vmem [#allocation7], %s4583_s30 }
  0xb5   : > { %s507_s18 = scalar_lea.sflag [#allocation9], %s488_s2 }
  0xba   : > { %s508_s13 = sand.u32 1, %s5198_s29  }
  0xbb   : > { %s3105_s20 = sshll.u32 %s508_s13, 9 }
  0xbc   : > { %s4599_s4 = scalar_lea.vmem [#allocation8], %s3105_s20 }
  0xbd   : > { %4175 = dma.done.wait (%p4412_p13), %s507_s18, 10240  }
  0xbe   : > { %4177 = vsyncadd (%p4412_p13), %s507_s18, 4294957056  ;;  %s3106_s28 = sshll.u32 %s508_s13, 7  ;;  %s525_s26 = scalar_lea.sflag [#allocation12], %s488_s2 }
  0xbf   : > { %s4605_s27 = scalar_lea.vmem [#allocation10], %s3106_s28  ;;  %s4607_s11 = scalar_lea.vmem [#allocation11], %s3106_s28 }
  0xc0   : > { %4179 = dma.done.wait (%p4412_p13), %s525_s26, 2304  }
  0xc1   : > { %4181 = vsyncadd (%p4412_p13), %s525_s26, 4294964992  ;;  %s5200_s23 = sld [smem:[#allocation25_spill]]  ;;  %s3108_s19 = sshll.u32 %s508_s13, 4 }
  0xc2   : > { %s5201_s7 = sld [smem:[#allocation24_spill]]  ;;  %s4628_s18 = scalar_lea.vmem [#allocation13], %s3108_s19 }
  0xc3   : > { %s5202_s25 = sld [smem:[#allocation39_spill]]  ;;  %s4631_s28 = scalar_lea.vmem [#allocation14], %s4583_s30 }
  0xc4   : > { %s5203_s24 = sld [smem:[#allocation42_spill]] }
  0xc7   : > { %p609_p3 = scmp.lt.s32.totalorder %s5200_s23, 1 }
  0xc8   : > { %p612_p11 = scmp.lt.s32.totalorder %s5201_s7, 1  ;;  %p3111_p13 = scmp.ne.s32.totalorder %s5201_s7, 0 }
  0xc9   : > { %s5231_s23 = smov (!%p609_p3, %s5200_s23), 1 }
  0xca   : > { %s613_s1 = scalar_select %p612_p11, %s5201_s7, 1 }
  0xcb   : > { %s611_s9 = scalar_lea.vmem %s5202_s25, %s5231_s23  ;;  %620 = sbr.rel (%p3111_p13) target bundleno = 210 (0xd2), region = 88 }
  0xcc   : > { %s3110_s2 = sshll.u32 %s613_s1, 1 }
  0xcd   : > { %s4626_s20 = scalar_lea.vmem %s5203_s24, %s3110_s2 }
  0xd0   : > { %v621_v0 = vld [vmem:[%s483_s21] sm:$0xff] }
  0xd1   : > { %622 = vst [vmem:[%s4631_s28] sm:$0xff] %v621_v0 }
  0xd2 PF: > { %v3757_v1 = vld [vmem:[%s4599_s4 + $0x78] sm:$0xff]   ;;  %v4241_v2 = vmov 0.0   ;;  %v3759_v4 = vld [vmem:[%s4599_s4 + $0x70] sm:$0xff]   ;;  %vm4242_vm0 = vmmov 0   ;;  %v3761_v6 = vld [vmem:[%s4599_s4 + $0x68] sm:$0xff]   ;;  %v807_v20 = vlaneseq  ;;  %vm1086_vm1 = vcmask 261120  }
  0xd3   : > { %3379 = vmatprep.subr.bf16.mxu1 %v4241_v2  ;;  %3359 = vmatprep.subr.bf16.mxu0 %v4241_v2  ;;  %v3758_v3 = vld [vmem:[%s4599_s4 + $0x38] sm:$0xff]   ;;  %v3760_v5 = vld [vmem:[%s4599_s4 + $0x30] sm:$0xff]   ;;  %v3762_v7 = vld [vmem:[%s4599_s4 + $0x28] sm:$0xff]   ;;  %s4243_s21 = smov 96   ;;  %vm1135_vm2 = vcmask 64512   ;;  %vm1151_vm3 = vcmask 1043456  }
  0xd4   : > { %3380 = vmatpush3.bf16.msra.mxu1 %v3757_v1  ;;  %3395 = vmatprep.mubr.msk.bf16.mxu1 %vm4242_vm0, %v4241_v2  ;;  %v3763_v8 = vld [vmem:[%s4599_s4 + $0x60] sm:$0xff]   ;;  %v3765_v10 = vld [vmem:[%s4599_s4 + $0x58] sm:$0xff]   ;;  %v3767_v12 = vld [vmem:[%s4599_s4 + $0x50] sm:$0xff]   ;;  %v4684_v21 = vshrl.u32 %v807_v20, 7  ;;  %s4244_s13 = smov 64   ;;  %vm1547_vm4 = vcmask 523264  }
  0xd5   : > { %3360 = vmatpush3.bf16.msra.mxu0 %v3758_v3  ;;  %3381 = vmatprep.subr.bf16.mxu1 %v4241_v2  ;;  %v3764_v9 = vld [vmem:[%s4599_s4 + $0x20] sm:$0xff]   ;;  %v3766_v11 = vld [vmem:[%s4599_s4 + $0x18] sm:$0xff]   ;;  %v3768_v13 = vld [vmem:[%s4599_s4 + $0x10] sm:$0xff]   ;;  %vm1549_vm5 = vcmask 785408   ;;  %s2848_s23 = sshll.u32 %s4631_s28, 4  ;;  %s5207_s1 = sld [smem:[#allocation43_spill]]  ;;  %s2849_s23 = int_to_ptr.vmem [resolvable:$true] %s2848_s23 }
  0xd6   : > { %3361 = vmatprep.subr.bf16.mxu0 %v4241_v2  ;;  %3375 = vmatprep.mubr.msk.bf16.mxu0 %vm4242_vm0, %v4241_v2  ;;  %v3769_v14 = vld [vmem:[%s4599_s4 + $0x48] sm:$0xff]   ;;  %v3771_v16 = vld [vmem:[%s4599_s4 + $0x40] sm:$0xff]   ;;  %v4687_v22 = vsub.s32 1, %v4684_v21  ;;  %v4693_v24 = vsub.s32 0, %v4684_v21  ;;  %v3773_v40 = vld [vmem:[%s4599_s4 + $0xb8] sm:$0xff]   ;;  %v995_v61 = vsub.s32 2, %v4684_v21 }
  0xd7   : > { %v3770_v15 = vld [vmem:[%s4599_s4 + $0x8] sm:$0xff]   ;;  %v3772_v18 = vld [vmem:[%s4599_s4] sm:$0xff]   ;;  %v3774_v41 = vld [vmem:[%s4599_s4 + $0xb0] sm:$0xff]   ;;  %s2835_s10 = scalar_lea.sflag [#allocation4], %s4580_s22  ;;  %s4096_s25 = scalar_lea.vmem %s2849_s23, 128 }
  0xd8   : > { %3382 = vmatpush3.bf16.msra.mxu1 %v3759_v4  ;;  %v4671_v17 = vld [vmem:[%s4631_s28] sm:$0xff]  ;;  %v3777_v44 = vld [vmem:[%s4599_s4 + $0x98] sm:$0xff]   ;;  %v3778_v45 = vld [vmem:[%s4599_s4 + $0x90] sm:$0xff]   ;;  %p4097_p8 = scmp.ne.s32.totalorder %s2849_s23, %s4096_s25 }
  0xd9   : > { %3362 = vmatpush3.bf16.msra.mxu0 %v3760_v5  ;;  %3383 = vmatprep.subr.bf16.mxu1 %v4241_v2  ;;  %v806_v19 = vpack.c.bf16 %v4671_v17, %v4671_v17  ;;  %v4690_v23 = vld [vmem:[%s4628_s18] sm:$0xff]  ;;  %v3775_v42 = vld [vmem:[%s4599_s4 + $0xa8] sm:$0xff]   ;;  %v4734_v49 = vld [vmem:[%s501_s16] sm:$0xff]  ;;  %s4245_s16 = smov 32  }
  0xda   : > { %3363 = vmatprep.subr.bf16.mxu0 %v4241_v2  ;;  %v903_v25 = vrot.slane %v4690_v23, %v4687_v22  ;;  %v810_v26 = vrot.slane %v4690_v23, %v4693_v24  ;;  %v3776_v43 = vld [vmem:[%s4599_s4 + $0xa0] sm:$0xff]   ;;  %v3779_v46 = vld [vmem:[%s4599_s4 + $0x88] sm:$0xff]   ;;  %v996_v63 = vrot.slane %v4690_v23, %v995_v61  ;;  %p4098_p2 = pnand %p4097_p8, %p4421_p7 }
  0xdb   : > { %v3780_v47 = vld [vmem:[%s4599_s4 + $0x80] sm:$0xff]  }
  0xdc   : > { %3384 = vmatpush3.bf16.msra.mxu1 %v3761_v6  ;;  %p4099_p6 = pneg %p4098_p2 }
  0xdd   : > { %3364 = vmatpush3.bf16.msra.mxu0 %v3762_v7  ;;  %3385 = vmatprep.subr.bf16.mxu1 %v4241_v2 }
  0xde   : > { %3365 = vmatprep.subr.bf16.mxu0 %v4241_v2 }
  0xe0   : > { %3386 = vmatpush3.bf16.msra.mxu1 %v3763_v8 }
  0xe1   : > { %3366 = vmatpush3.bf16.msra.mxu0 %v3764_v9  ;;  %3387 = vmatprep.subr.bf16.mxu1 %v4241_v2 }
  0xe2   : > { %3367 = vmatprep.subr.bf16.mxu0 %v4241_v2 }
  0xe4   : > { %3388 = vmatpush3.bf16.msra.mxu1 %v3765_v10 }
  0xe5   : > { %3368 = vmatpush3.bf16.msra.mxu0 %v3766_v11  ;;  %3389 = vmatprep.subr.bf16.mxu1 %v4241_v2 }
  0xe6   : > { %3369 = vmatprep.subr.bf16.mxu0 %v4241_v2 }
  0xe8   : > { %3390 = vmatpush3.bf16.msra.mxu1 %v3767_v12 }
  0xe9   : > { %3370 = vmatpush3.bf16.msra.mxu0 %v3768_v13  ;;  %3391 = vmatprep.subr.bf16.mxu1 %v4241_v2 }
  0xea   : > { %3371 = vmatprep.subr.bf16.mxu0 %v4241_v2 }
  0xec   : > { %3392 = vmatpush3.bf16.msra.mxu1 %v3769_v14 }
  0xed   : > { %3372 = vmatpush3.bf16.msra.mxu0 %v3770_v15  ;;  %3393 = vmatprep.subr.bf16.mxu1 %v4241_v2 }
  0xee   : > { %3373 = vmatprep.subr.bf16.mxu0 %v4241_v2 }
  0xf0   : > { %3394 = vmatpush3.bf16.msra.mxu1 %v3771_v16 }
  0xf1   : > { %3374 = vmatpush3.bf16.msra.mxu0 %v3772_v18  ;;  %3419 = vmatprep.subr.bf16.mxu1 %v4241_v2 }
  0xf2   : > { %3399 = vmatprep.subr.bf16.mxu0 %v4241_v2 }
  0xf3   : > { %3396 = vmatmul.mubr.bf16.vlgmr.msra.gmra.mxu1 %v806_v19 }
  0xf4   : > { %3376 = vmatmul.mubr.bf16.vlgmr.msra.gmra.mxu0 %v806_v19  ;;  %3421 = vmatprep.mubr.msk.bf16.mxu1 %vm4242_vm0, %v4241_v2 }
  0xf5   : > { %3415 = vmatprep.mubr.msk.bf16.mxu0 %vm4242_vm0, %v4241_v2  ;;  %3400 = vmatpush3.bf16.msra.mxu0 %v3773_v40 }
  0xf6   : > { %3401 = vmatprep.subr.bf16.mxu0 %v4241_v2 }
  0xf9   : > { %3402 = vmatpush3.bf16.msra.mxu0 %v3774_v41 }
  0xfa   : > { %3403 = vmatprep.subr.bf16.mxu0 %v4241_v2 }
  0xfd   : > { %3404 = vmatpush3.bf16.msra.mxu0 %v3775_v42 }
  0xfe   : > { %3405 = vmatprep.subr.bf16.mxu0 %v4241_v2 }
 0x101   : > { %3406 = vmatpush3.bf16.msra.mxu0 %v3776_v43 }
 0x102   : > { %3407 = vmatprep.subr.bf16.mxu0 %v4241_v2 }
 0x105   : > { %3408 = vmatpush3.bf16.msra.mxu0 %v3777_v44 }
 0x106   : > { %3409 = vmatprep.subr.bf16.mxu0 %v4241_v2 }
 0x109   : > { %3410 = vmatpush3.bf16.msra.mxu0 %v3778_v45 }
 0x10a   : > { %3411 = vmatprep.subr.bf16.mxu0 %v4241_v2 }
 0x10d   : > { %3412 = vmatpush3.bf16.msra.mxu0 %v3779_v46 }
 0x10e   : > { %3413 = vmatprep.subr.bf16.mxu0 %v4241_v2 }
 0x111   : > { %3414 = vmatpush3.bf16.msra.mxu0 %v3780_v47 }
 0x112   : > { %3467 = vmatprep.subr.bf16.mxu0 %v4241_v2 }
 0x114   : > { %3416 = vmatmul.mubr.bf16.vlgmr.msra.gmra.mxu0 %v806_v19 }
 0x115   : > { %3483 = vmatprep.mubr.msk.bf16.mxu0 %vm4242_vm0, %v4241_v2 }
 0x1b3   : > { %v986_v27 = vpop.f32.mrf.mxu1 }
 0x1b4   : > { %v987_v28 = vadd.f32 %v986_v27, %v903_v25  ;;  %v893_v29 = vpop.f32.mrf.mxu0 }
 0x1b5   : > { %v3397_v30 = vpop.f32.mrf.mxu1  ;;  %v894_v31 = vadd.f32 %v893_v29, %v810_v26 }
 0x1b6   : > { %v4699_v32 = vpack.c.bf16 %v987_v28, %v987_v28  ;;  %v3377_v33 = vpop.f32.mrf.mxu0 }
 0x1b7   : > { %v989_v34 = vpop.f32.mrf.mxu1  ;;  %v4701_v35 = vpack.c.bf16 %v894_v31, %v894_v31 }
 0x1b8   : > { %1199 = vrot.lane.b32.xlu1 %v4699_v32, %s4243_s21  ;;  %v1091_v36 = vsel %vm1086_vm1, %v4699_v32, 0  ;;  %v896_v37 = vpop.f32.mrf.mxu0 }
 0x1b9   : > { %v3398_v38 = vpop.f32.mrf.mxu1  ;;  %3420 = vmatpush3.bf16.xpose.msra.mxu1 %v1091_v36 }
 0x1ba   : > { %v3378_v39 = vpop.f32.mrf.mxu0  ;;  %3425 = vmatprep.subr.bf16.mxu1 %v4241_v2 }
 0x1bc   : > { %1196 = vrot.lane.b32.xlu1 %v4701_v35, %s4243_s21 }
 0x1c0   : > { %3422 = vmatmul.mubr.msk.bf16.vlgmr.msra.gmra.mxu1 %vm1086_vm1, %v4701_v35 }
 0x1c1   : > { %3427 = vmatprep.mubr.msk.bf16.mxu1 %vm4242_vm0, %v4241_v2 }
 0x1d4   : > { %v1079_v62 = vpop.f32.mrf.mxu0 }
 0x1d5   : > { %v1080_v1 = vadd.f32 %v1079_v62, %v996_v63 }
 0x1d6   : > { %v3417_v0 = vpop.f32.mrf.mxu0 }
 0x1d7   : > { %v4743_v4 = vpack.c.bf16 %v1080_v1, %v1080_v1 }
 0x1d8   : > { %v1082_v3 = vpop.f32.mrf.mxu0 }
 0x1d9   : > { %v1153_v6 = vsel %vm1151_vm3, %v4743_v4, 0 }
 0x1da   : > { %v3418_v5 = vpop.f32.mrf.mxu0  ;;  %3426 = vmatpush3.bf16.msra.mxu1 %v1153_v6 }
 0x1db   : > { %3431 = vmatprep.subr.bf16.mxu1 %v4241_v2 }
 0x22a   : > { %v1200_v10 = vpop.permute.xlu1 %1199 }
 0x22b   : > { %v1205_v12 = vsel %vm1086_vm1, %v1200_v10, 0 }
 0x22e   : > { %v1197_v13 = vpop.permute.xlu1 %1196 }
 0x280   : > { %v1127_v48 = vpop.f32.mrf.mxu1 }
 0x281   : > { %v1133_v50 = vmul.f32 0.17677669, %v1127_v48 }
 0x282   : > { %v3423_v51 = vpop.f32.mrf.mxu1 }
 0x283   : > { %v1134_v52 = vadd.f32 %v1133_v50, %v4734_v49 }
 0x284   : > { %v1130_v53 = vpop.f32.mrf.mxu1 }
 0x285   : > { %v1136_v54 = vsel %vm1135_vm2, %v1134_v52, -inf }
 0x286   : > { %1137 = vmax.xlane.f32.xlu0 %v1136_v54  ;;  %v3424_v55 = vpop.f32.mrf.mxu1 }
 0x30f   : > { %v1138_v56 = vpop.xlane.xlu0 %1137 }
 0x310   : > { %v1139_v57 = vsub.f32 %v1134_v52, %v1138_v56 }
 0x312   : > { %v1140_v58 = vmul.f32 1.442695, %v1139_v57 }
 0x314   : > { %3861 = vpow2.f32 %v1140_v58 }
 0x321   : > { %v3862_v59 = vpop.eup %3861 }
 0x322   : > { %v1142_v60 = vsel %vm1135_vm2, %v3862_v59, 0.0 }
 0x323   : > { %1143 = vadd.xlane.f32.xlu0 %v1142_v60 }
 0x3ac   : > { %v1144_v7 = vpop.xlane.xlu0 %1143 }
 0x3ad   : > { %3863 = vrcp.f32 %v1144_v7 }
 0x3ba   : > { %v3864_v8 = vpop.eup %3863 }
 0x3bb   : > { %v1146_v9 = vmul.f32 %v3864_v8, %v3862_v59 }
 0x3bd   : > { %v1147_v11 = vpack.c.bf16 %v1146_v9, %v1146_v9 }
 0x3bf   : > { %3428 = vmatmul.mubr.msk.bf16.vlgmr.msra.gmra.mxu1 %vm1135_vm2, %v1147_v11 }
 0x3c0   : > { %3432 = vmatpush3.bf16.xpose.msra.mxu1 %v1205_v12  ;;  %3433 = vmatprep.mubr.msk.bf16.mxu1 %vm4242_vm0, %v4241_v2 }
 0x3c1   : > { %3437 = vmatprep.subr.bf16.mxu1 %v4241_v2 }
 0x3c7   : > { %3434 = vmatmul.mubr.msk.bf16.vlgmr.msra.gmra.mxu1 %vm1086_vm1, %v1197_v13 }
 0x3c8   : > { %3439 = vmatprep.mubr.msk.bf16.mxu1 %vm4242_vm0, %v4241_v2 }
 0x47f   : > { %v4756_v14 = vpop.f32.mrf.mxu1 }
 0x481   : > { %v3429_v15 = vpop.f32.mrf.mxu1 }
 0x483   : > { %v1192_v16 = vpop.f32.mrf.mxu1 }
 0x485   : > { %v3430_v18 = vpop.f32.mrf.mxu1 }
 0x487   : > { %v1241_v19 = vpop.f32.mrf.mxu1 }
 0x488   : > { %v1247_v20 = vmul.f32 0.17677669, %v1241_v19 }
 0x489   : > { %v3435_v25 = vpop.f32.mrf.mxu1 }
 0x48a   : > { %v1248_v26 = vadd.f32 %v1247_v20, %v4734_v49 }
 0x48b   : > { %v1244_v27 = vpop.f32.mrf.mxu1 }
 0x48c   : > { %v1249_v28 = vsel %vm1135_vm2, %v1248_v26, -inf }
 0x48d   : > { %1250 = vmax.xlane.f32.xlu0 %v1249_v28  ;;  %v3436_v29 = vpop.f32.mrf.mxu1 }
 0x4a3   : > { %1262 = vrot.lane.b32.xlu0 %v4743_v4, %s4243_s21 }
 0x4a7   : > { %1312 = vrot.lane.b32.xlu0 %v4699_v32, %s4244_s13 }
 0x4ab   : > { %1310 = vrot.lane.b32.xlu0 %v4701_v35, %s4244_s13 }
 0x516   : > { %v1251_v30 = vpop.xlane.xlu0 %1250 }
 0x517   : > { %v1252_v31 = vsub.f32 %v1248_v26, %v1251_v30 }
 0x519   : > { %v1253_v33 = vmul.f32 1.442695, %v1252_v31 }
 0x51a   : > { %v1263_v34 = vpop.permute.xlu0 %1262 }
 0x51b   : > { %3865 = vpow2.f32 %v1253_v33  ;;  %v1268_v36 = vsel %vm1151_vm3, %v1263_v34, 0 }
 0x51c   : > { %3438 = vmatpush3.bf16.msra.mxu1 %v1268_v36 }
 0x51d   : > { %3443 = vmatprep.subr.bf16.mxu1 %v4241_v2 }
 0x51e   : > { %v1313_v42 = vpop.permute.xlu0 %1312 }
 0x51f   : > { %v1318_v44 = vsel %vm1086_vm1, %v1313_v42, 0  ;;  %v3786_v42 = vld [vmem:[%s4599_s4 + $0xd0] sm:$0xff]  }
 0x522   : > { %v1311_v46 = vpop.permute.xlu0 %1310 }
 0x528   : > { %v3866_v37 = vpop.eup %3865 }
 0x529   : > { %v1255_v38 = vsel %vm1135_vm2, %v3866_v37, 0.0 }
 0x52a   : > { %1256 = vadd.xlane.f32.xlu1 %v1255_v38  ;;  %v3782_v38 = vld [vmem:[%s4599_s4 + $0xf0] sm:$0xff]  }
 0x53b   : > { %1374 = vrot.lane.b32.xlu1 %v4743_v4, %s4244_s13 }
 0x5b3   : > { %v1257_v39 = vpop.xlane.xlu1 %1256 }
 0x5b4   : > { %3867 = vrcp.f32 %v1257_v39  ;;  %v3783_v39 = vld [vmem:[%s4599_s4 + $0xe8] sm:$0xff]  }
 0x5b7   : > { %v1375_v45 = vpop.permute.xlu1 %1374 }
 0x5b8   : > { %v1380_v47 = vsel %vm1151_vm3, %v1375_v45, 0 }
 0x5c1   : > { %v3868_v40 = vpop.eup %3867 }
 0x5c2   : > { %v1259_v41 = vmul.f32 %v3868_v40, %v3866_v37  ;;  %v3781_v37 = vld [vmem:[%s4599_s4 + $0xf8] sm:$0xff]   ;;  %v3784_v40 = vld [vmem:[%s4599_s4 + $0xe0] sm:$0xff]  }
 0x5c3   : > { %3468 = vmatpush3.bf16.msra.mxu0 %v3781_v37 }
 0x5c4   : > { %v1260_v43 = vpack.c.bf16 %v1259_v41, %v1259_v41  ;;  %3469 = vmatprep.subr.bf16.mxu0 %v4241_v2  ;;  %v3785_v41 = vld [vmem:[%s4599_s4 + $0xd8] sm:$0xff]  }
 0x5c6   : > { %3440 = vmatmul.mubr.msk.bf16.vlgmr.msra.gmra.mxu1 %vm1135_vm2, %v1260_v43  ;;  %v3787_v43 = vld [vmem:[%s4599_s4 + $0xc8] sm:$0xff]  }
 0x5c7   : > { %3444 = vmatpush3.bf16.xpose.msra.mxu1 %v1318_v44  ;;  %3445 = vmatprep.mubr.msk.bf16.mxu1 %vm4242_vm0, %v4241_v2  ;;  %v3788_v44 = vld [vmem:[%s4599_s4 + $0xc0] sm:$0xff]  }
 0x5c8   : > { %3449 = vmatprep.subr.bf16.mxu1 %v4241_v2  ;;  %3470 = vmatpush3.bf16.msra.mxu0 %v3782_v38 }
 0x5c9   : > { %3471 = vmatprep.subr.bf16.mxu0 %v4241_v2 }
 0x5cc   : > { %3472 = vmatpush3.bf16.msra.mxu0 %v3783_v39 }
 0x5cd   : > { %3473 = vmatprep.subr.bf16.mxu0 %v4241_v2 }
 0x5ce   : > { %3446 = vmatmul.mubr.msk.bf16.vlgmr.msra.gmra.mxu1 %vm1086_vm1, %v1311_v46 }
 0x5cf   : > { %3450 = vmatpush3.bf16.msra.mxu1 %v1380_v47  ;;  %3451 = vmatprep.mubr.msk.bf16.mxu1 %vm4242_vm0, %v4241_v2 }
 0x5d0   : > { %3455 = vmatprep.subr.bf16.mxu1 %v4241_v2  ;;  %3474 = vmatpush3.bf16.msra.mxu0 %v3784_v40 }
 0x5d1   : > { %3475 = vmatprep.subr.bf16.mxu0 %v4241_v2 }
 0x5d4   : > { %3476 = vmatpush3.bf16.msra.mxu0 %v3785_v41  ;;  %v1765_v41 = vsub.s32 5, %v4684_v21 }
 0x5d5   : > { %3477 = vmatprep.subr.bf16.mxu0 %v4241_v2 }
 0x5d8   : > { %3478 = vmatpush3.bf16.msra.mxu0 %v3786_v42  ;;  %v1766_v42 = vrot.slane %v4690_v23, %v1765_v41 }
 0x5d9   : > { %3479 = vmatprep.subr.bf16.mxu0 %v4241_v2 }
 0x5dc   : > { %3480 = vmatpush3.bf16.msra.mxu0 %v3787_v43 }
 0x5dd   : > { %3481 = vmatprep.subr.bf16.mxu0 %v4241_v2 }
 0x5e0   : > { %3482 = vmatpush3.bf16.msra.mxu0 %v3788_v44 }
 0x5e1   : > { %3507 = vmatprep.subr.bf16.mxu0 %v4241_v2 }
 0x686   : > { %v1304_v48 = vpop.f32.mrf.mxu1 }
 0x688   : > { %v3441_v50 = vpop.f32.mrf.mxu1 }
 0x68a   : > { %v1307_v51 = vpop.f32.mrf.mxu1 }
 0x68c   : > { %v3442_v52 = vpop.f32.mrf.mxu1 }
 0x68e   : > { %v1354_v53 = vpop.f32.mrf.mxu1 }
 0x68f   : > { %v1360_v54 = vmul.f32 0.17677669, %v1354_v53 }
 0x690   : > { %v3447_v55 = vpop.f32.mrf.mxu1 }
 0x691   : > { %v1361_v56 = vadd.f32 %v1360_v54, %v4734_v49 }
 0x692   : > { %v1357_v57 = vpop.f32.mrf.mxu1 }
 0x693   : > { %v1362_v58 = vsel %vm1135_vm2, %v1361_v56, -inf  ;;  %v3789_v57 = vld [vmem:[%s4599_s4 + $0x178] sm:$0xff]  }
 0x694   : > { %1363 = vmax.xlane.f32.xlu0 %v1362_v58  ;;  %v3448_v59 = vpop.f32.mrf.mxu1  ;;  %v3793_v58 = vld [vmem:[%s4599_s4 + $0x138] sm:$0xff]  }
 0x695   : > { %v3790_v59 = vld [vmem:[%s4599_s4 + $0x170] sm:$0xff]  }
 0x71d   : > { %v1364_v60 = vpop.xlane.xlu0 %1363 }
 0x71e   : > { %v1365_v62 = vsub.f32 %v1361_v56, %v1364_v60  ;;  %v3792_v60 = vld [vmem:[%s4599_s4 + $0x160] sm:$0xff]  }
 0x720   : > { %v1366_v63 = vmul.f32 1.442695, %v1365_v62  ;;  %v1554_v62 = vsub.s32 3, %v4684_v21 }
 0x722   : > { %3869 = vpow2.f32 %v1366_v63  ;;  %v1555_v63 = vrot.slane %v4690_v23, %v1554_v62 }
 0x72f   : > { %v3870_v0 = vpop.eup %3869 }
 0x730   : > { %v1368_v1 = vsel %vm1135_vm2, %v3870_v0, 0.0 }
 0x731   : > { %1369 = vadd.xlane.f32.xlu1 %v1368_v1 }
 0x742   : > { %1424 = vrot.lane.b32.xlu1 %v4699_v32, %s4245_s16 }
 0x746   : > { %1422 = vrot.lane.b32.xlu1 %v4701_v35, %s4245_s16 }
 0x7ba   : > { %v1370_v3 = vpop.xlane.xlu1 %1369 }
 0x7bb   : > { %3871 = vrcp.f32 %v1370_v3 }
 0x7be   : > { %v1425_v7 = vpop.permute.xlu1 %1424 }
 0x7bf   : > { %v1430_v9 = vsel %vm1086_vm1, %v1425_v7, 0 }
 0x7c2   : > { %v1423_v32 = vpop.permute.xlu1 %1422 }
 0x7c8   : > { %v3872_v5 = vpop.eup %3871 }
 0x7c9   : > { %v1372_v6 = vmul.f32 %v3872_v5, %v3870_v0 }
 0x7cb   : > { %v1373_v8 = vpack.c.bf16 %v1372_v6, %v1372_v6 }
 0x7cd   : > { %3452 = vmatmul.mubr.msk.bf16.vlgmr.msra.gmra.mxu1 %vm1135_vm2, %v1373_v8 }
 0x7ce   : > { %3456 = vmatpush3.bf16.xpose.msra.mxu1 %v1430_v9  ;;  %3457 = vmatprep.mubr.msk.bf16.mxu1 %vm4242_vm0, %v4241_v2  ;;  %v3794_v9 = vld [vmem:[%s4599_s4 + $0x158] sm:$0xff]  }
 0x7cf   : > { %3461 = vmatprep.subr.bf16.mxu1 %v4241_v2 }
 0x7d5   : > { %3458 = vmatmul.mubr.msk.bf16.vlgmr.msra.gmra.mxu1 %vm1086_vm1, %v1423_v32  ;;  %v3795_v32 = vld [vmem:[%s4599_s4 + $0x130] sm:$0xff]  }
 0x7d6   : > { %3463 = vmatprep.mubr.msk.bf16.mxu1 %vm4242_vm0, %v4241_v2 }
 0x88d   : > { %v1416_v35 = vpop.f32.mrf.mxu1 }
 0x88f   : > { %v3453_v10 = vpop.f32.mrf.mxu1 }
 0x890   : > { %v3798_v10 = vld [vmem:[%s4599_s4 + $0x148] sm:$0xff]  }
 0x891   : > { %v1419_v11 = vpop.f32.mrf.mxu1 }
 0x892   : > { %v3799_v11 = vld [vmem:[%s4599_s4 + $0x120] sm:$0xff]  }
 0x893   : > { %v3454_v12 = vpop.f32.mrf.mxu1 }
 0x894   : > { %v3800_v12 = vld [vmem:[%s4599_s4 + $0x140] sm:$0xff]  }
 0x895   : > { %v1466_v13 = vpop.f32.mrf.mxu1 }
 0x896   : > { %v1472_v15 = vmul.f32 0.17677669, %v1466_v13  ;;  %v624_v13 = vld [vmem:[%s492_s8] sm:$0xff] }
 0x897   : > { %v3459_v16 = vpop.f32.mrf.mxu1 }
 0x898   : > { %v1473_v18 = vadd.f32 %v1472_v15, %v4734_v49  ;;  %v3801_v15 = vld [vmem:[%s4599_s4 + $0x118] sm:$0xff]   ;;  %v4862_v16 = vpack.c.bf16 %v624_v13, %v624_v13 }
 0x899   : > { %v1469_v19 = vpop.f32.mrf.mxu1 }
 0x89a   : > { %v1474_v20 = vsel %vm1135_vm2, %v1473_v18, -inf  ;;  %v3803_v19 = vld [vmem:[%s4599_s4 + $0x108] sm:$0xff]  }
 0x89b   : > { %1475 = vmax.xlane.f32.xlu0 %v1474_v20  ;;  %v3460_v25 = vpop.f32.mrf.mxu1  ;;  %v3804_v20 = vld [vmem:[%s4599_s4 + $0x100] sm:$0xff]  }
 0x8b1   : > { %1486 = vrot.lane.b32.xlu0 %v4743_v4, %s4245_s16 }
 0x8b5   : > { %1535 = vrot.lane.b32.xlu0 %v1304_v48, %s4245_s16 }
 0x8b9   : > { %1539 = vrot.lane.b32.xlu0 %v1416_v35, %s4244_s13  ;;  %v3796_v35 = vld [vmem:[%s4599_s4 + $0x150] sm:$0xff]  }
 0x924   : > { %v1476_v26 = vpop.xlane.xlu0 %1475 }
 0x925   : > { %v1477_v27 = vsub.f32 %v1473_v18, %v1476_v26  ;;  %v3802_v18 = vld [vmem:[%s4599_s4 + $0x110] sm:$0xff]  }
 0x927   : > { %v1478_v28 = vmul.f32 1.442695, %v1477_v27 }
 0x928   : > { %v1487_v29 = vpop.permute.xlu0 %1486 }
 0x929   : > { %3873 = vpow2.f32 %v1478_v28  ;;  %v1492_v49 = vsel %vm1151_vm3, %v1487_v29, 0 }
 0x92a   : > { %3462 = vmatpush3.bf16.msra.mxu1 %v1492_v49 }
 0x92b   : > { %3487 = vmatprep.subr.bf16.mxu1 %v4241_v2 }
 0x92c   : > { %v1536_v50 = vpop.permute.xlu0 %1535 }
 0x92d   : > { %v1546_v52 = vsel %vm1086_vm1, %v4756_v14, %v1536_v50  ;;  %v3791_v14 = vld [vmem:[%s4599_s4 + $0x168] sm:$0xff]   ;;  %v1672_v50 = vsub.s32 4, %v4684_v21 }
 0x930   : > { %v1540_v51 = vpop.permute.xlu0 %1539 }
 0x931   : > { %v1548_v53 = vsel %vm1547_vm4, %v1546_v52, %v1540_v51  ;;  %v1673_v51 = vrot.slane %v4690_v23, %v1672_v50 }
 0x936   : > { %v3874_v30 = vpop.eup %3873 }
 0x937   : > { %v1480_v4 = vsel %vm1135_vm2, %v3874_v30, 0.0 }
 0x938   : > { %1481 = vadd.xlane.f32.xlu1 %v1480_v4  ;;  %v4876_v4 = vld [vmem:[%s4628_s18 + $0x8] sm:$0xff] }
 0x9c1   : > { %v1482_v31 = vpop.xlane.xlu1 %1481 }
 0x9c2   : > { %3875 = vrcp.f32 %v1482_v31  ;;  %v1661_v31 = vrot.slane %v4876_v4, %v4687_v22 }
 0x9cf   : > { %v3876_v33 = vpop.eup %3875 }
 0x9d0   : > { %v1484_v34 = vmul.f32 %v3876_v33, %v3874_v30 }
 0x9d2   : > { %v1485_v36 = vpack.c.bf16 %v1484_v34, %v1484_v34 }
 0x9d4   : > { %3464 = vmatmul.mubr.msk.bf16.vlgmr.msra.gmra.mxu1 %vm1135_vm2, %v1485_v36  ;;  %v1666_v36 = vrot.slane %v4876_v4, %v995_v61 }
 0x9d5   : > { %3503 = vmatprep.mubr.msk.bf16.mxu1 %vm4242_vm0, %v4241_v2  ;;  %3488 = vmatpush3.bf16.msra.mxu1 %v3793_v58 }
 0x9d6   : > { %3489 = vmatprep.subr.bf16.mxu1 %v4241_v2 }
 0x9d9   : > { %3490 = vmatpush3.bf16.msra.mxu1 %v3795_v32 }
 0x9da   : > { %3491 = vmatprep.subr.bf16.mxu1 %v4241_v2 }
 0xa94   : > { %v1528_v45 = vpop.f32.mrf.mxu1 }
 0xa95   : > { %1543 = vrot.lane.b32.xlu0 %v1528_v45, %s4243_s21 }
 0xa96   : > { %v3465_v46 = vpop.f32.mrf.mxu1 }
 0xa98   : > { %v1531_v47 = vpop.f32.mrf.mxu1 }
 0xa9a   : > { %v3466_v48 = vpop.f32.mrf.mxu1 }
 0xb07   : > { %v1544_v54 = vpop.permute.xlu0 %1543 }
 0xb08   : > { %v1550_v55 = vsel %vm1549_vm5, %v1548_v53, %v1544_v54 }
 0xb09   : > { %v1551_v56 = vpack.c.bf16 %v1550_v55, %v1550_v55 }
 0xb0b   : > { %3484 = vmatmul.mubr.bf16.vlgmr.msra.gmra.mxu0 %v1551_v56 }
 0xb0c   : > { %3523 = vmatprep.mubr.msk.bf16.mxu0 %vm4242_vm0, %v4241_v2  ;;  %3508 = vmatpush3.bf16.msra.mxu0 %v3789_v57 }
 0xb0d   : > { %3509 = vmatprep.subr.bf16.mxu0 %v4241_v2 }
 0xb10   : > { %3510 = vmatpush3.bf16.msra.mxu0 %v3790_v59 }
 0xb11   : > { %3511 = vmatprep.subr.bf16.mxu0 %v4241_v2 }
 0xb14   : > { %3512 = vmatpush3.bf16.msra.mxu0 %v3791_v14  ;;  %v3805_v14 = vld [vmem:[%s4599_s4 + $0x1b8] sm:$0xff]  }
 0xb15   : > { %3513 = vmatprep.subr.bf16.mxu0 %v4241_v2 }
 0xb18   : > { %3514 = vmatpush3.bf16.msra.mxu0 %v3792_v60  ;;  %v3806_v60 = vld [vmem:[%s4599_s4 + $0x1b0] sm:$0xff]  }
 0xb19   : > { %3515 = vmatprep.subr.bf16.mxu0 %v4241_v2 }
 0xb1c   : > { %3516 = vmatpush3.bf16.msra.mxu0 %v3794_v9 }
 0xb1d   : > { %3517 = vmatprep.subr.bf16.mxu0 %v4241_v2 }
 0xb20   : > { %3518 = vmatpush3.bf16.msra.mxu0 %v3796_v35 }
 0xb21   : > { %3519 = vmatprep.subr.bf16.mxu0 %v4241_v2 }
 0xb24   : > { %3520 = vmatpush3.bf16.msra.mxu0 %v3798_v10 }
 0xb25   : > { %3521 = vmatprep.subr.bf16.mxu0 %v4241_v2 }
 0xb28   : > { %3522 = vmatpush3.bf16.msra.mxu0 %v3800_v12  ;;  %v3177_v12 = vld [vmem:[%s611_s9] ss:$0 sm:$0xff]  ;;  %s4247_s9 = smov [#allocation14]  }
 0xb29   : > { %3547 = vmatprep.subr.bf16.mxu0 %v4241_v2  ;;  %s4100_s2 = sshll.u32 %s4247_s9, 4  ;;  %s4101_s2 = int_to_ptr.vmem [resolvable:$false] %s4100_s2 }
 0xb2a   : > { %s4102_s15 = scalar_lea.vmem %s4101_s2, 256  ;;  %p4103_p9 = scmp.lt.s32.totalorder %s2849_s23, %s4101_s2 }
 0xb2b   : > { %3524 = vmatmul.mubr.bf16.vlgmr.msra.gmra.mxu0 %v4862_v16  ;;  %p4104_p1 = scmp.lt.s32.totalorder %s4102_s15, %s4096_s25 }
 0xb2c   : > { %3549 = vmatprep.mubr.msk.bf16.mxu0 %vm4242_vm0, %v4241_v2 }
 0xb2d   : > { %p4105_p10 = por %p4104_p1, %p4103_p9 }
 0xb2f   : > { %p4106_p12 = pnand %p4105_p10, %p4099_p6 }
 0xbcb   : > { %v1638_v0 = vpop.f32.mrf.mxu0 }
 0xbcc   : > { %v1639_v1 = vadd.f32 %v1638_v0, %v1555_v63  ;;  %v3807_v63 = vld [vmem:[%s4599_s4 + $0x1a8] sm:$0xff]   ;;  %v3808_v0 = vld [vmem:[%s4599_s4 + $0x1a0] sm:$0xff]  }
 0xbcd   : > { %v3485_v3 = vpop.f32.mrf.mxu0 }
 0xbce   : > { %v1644_v5 = vadd.f32 %v1639_v1, %v4671_v17  ;;  %v3797_v17 = vld [vmem:[%s4599_s4 + $0x128] sm:$0xff]   ;;  %v3809_v1 = vld [vmem:[%s4599_s4 + $0x198] sm:$0xff]   ;;  %v3810_v3 = vld [vmem:[%s4599_s4 + $0x190] sm:$0xff]  }
 0xbcf   : > { %v1641_v6 = vpop.f32.mrf.mxu0  ;;  %3492 = vmatpush3.bf16.msra.mxu1 %v3797_v17 }
 0xbd0   : > { %1645 = vadd.xlane.f32.xlu1 %v1644_v5  ;;  %v1648_v7 = vmul.f32 %v1644_v5, %v1644_v5  ;;  %3493 = vmatprep.subr.bf16.mxu1 %v4241_v2  ;;  %v3812_v6 = vld [vmem:[%s4599_s4 + $0x180] sm:$0xff]  }
 0xbd1   : > { %v3486_v8 = vpop.f32.mrf.mxu0 }
 0xbd2   : > { %1649 = vadd.xlane.f32.xlu0 %v1648_v7 }
 0xbd3   : > { %3494 = vmatpush3.bf16.msra.mxu1 %v3799_v11 }
 0xbd4   : > { %3495 = vmatprep.subr.bf16.mxu1 %v4241_v2 }
 0xbd7   : > { %3496 = vmatpush3.bf16.msra.mxu1 %v3801_v15 }
 0xbd8   : > { %3497 = vmatprep.subr.bf16.mxu1 %v4241_v2 }
 0xbdb   : > { %3498 = vmatpush3.bf16.msra.mxu1 %v3802_v18 }
 0xbdc   : > { %3499 = vmatprep.subr.bf16.mxu1 %v4241_v2 }
 0xbdf   : > { %3500 = vmatpush3.bf16.msra.mxu1 %v3803_v19 }
 0xbe0   : > { %3501 = vmatprep.subr.bf16.mxu1 %v4241_v2 }
 0xbe3   : > { %3502 = vmatpush3.bf16.msra.mxu1 %v3804_v20 }
 0xbe4   : > { %3527 = vmatprep.subr.bf16.mxu1 %v4241_v2 }
 0xbeb   : > { %v1849_v43 = vpop.f32.mrf.mxu0 }
 0xbec   : > { %v1850_v44 = vadd.f32 %v1849_v43, %v1766_v42 }
 0xbed   : > { %v3525_v61 = vpop.f32.mrf.mxu0 }
 0xbee   : > { %v1855_v45 = vpack.c.bf16 %v1850_v44, %v1850_v44 }
 0xbef   : > { %v1852_v46 = vpop.f32.mrf.mxu0 }
 0xbf0   : > { %2290 = vrot.lane.b32.xlu0 %v1855_v45, %s4245_s16  ;;  %2065 = vrot.lane.b32.xlu1 %v1855_v45, %s4243_s21  ;;  %v1953_v47 = vsel %vm1086_vm1, %v1855_v45, 0 }
 0xbf1   : > { %v3526_v48 = vpop.f32.mrf.mxu0  ;;  %3548 = vmatpush3.bf16.xpose.msra.mxu0 %v1953_v47 }
 0xbf2   : > { %3559 = vmatprep.subr.bf16.mxu0 %v4241_v2 }
 0xc59   : > { %v1646_v25 = vpop.xlane.xlu1 %1645 }
 0xc5a   : > { %v1647_v26 = vmul.f32 0.0078125, %v1646_v25 }
 0xc5b   : > { %v1650_v27 = vpop.xlane.xlu0 %1649 }
 0xc5c   : > { %v1652_v28 = vmul.f32 %v1647_v26, %v1647_v26  ;;  %v1651_v29 = vmul.f32 0.0078125, %v1650_v27  ;;  %v1654_v33 = vsub.f32 %v1644_v5, %v1647_v26  ;;  %v3811_v5 = vld [vmem:[%s4599_s4 + $0x188] sm:$0xff]  }
 0xc5e   : > { %v1653_v49 = vsub.f32 %v1651_v29, %v1652_v28 }
 0xc60   : > { %v1655_v30 = vadd.f32 1e-06, %v1653_v49 }
 0xc62   : > { %3877 = vrsqrt.f32 %v1655_v30  ;;  %v2066_v53 = vpop.permute.xlu1 %2065  ;;  %v2291_v32 = vpop.permute.xlu0 %2290 }
 0xc63   : > { %v2071_v57 = vsel %vm1086_vm1, %v2066_v53, 0  ;;  %v2296_v17 = vsel %vm1086_vm1, %v2291_v32, 0  ;;  %v1858_v53 = vsub.s32 6, %v4684_v21 }
 0xc6f   : > { %v3878_v34 = vpop.eup %3877 }
 0xc70   : > { %v1657_v37 = vmul.f32 %v3878_v34, %v1654_v33 }
 0xc72   : > { %v1662_v38 = vmul.f32 %v1661_v31, %v1657_v37 }
 0xc74   : > { %v4883_v39 = vadd.f32 %v1666_v36, %v1662_v38 }
 0xc76   : > { %v1668_v40 = vpack.c.bf16 %v4883_v39, %v4883_v39 }
 0xc78   : > { %3504 = vmatmul.mubr.bf16.vlgmr.msra.gmra.mxu1 %v1668_v40 }
 0xc79   : > { %3543 = vmatprep.mubr.msk.bf16.mxu1 %vm4242_vm0, %v4241_v2  ;;  %3528 = vmatpush3.bf16.msra.mxu1 %v3805_v14 }
 0xc7a   : > { %3529 = vmatprep.subr.bf16.mxu1 %v4241_v2 }
 0xc7d   : > { %3530 = vmatpush3.bf16.msra.mxu1 %v3806_v60 }
 0xc7e   : > { %3531 = vmatprep.subr.bf16.mxu1 %v4241_v2 }
 0xc81   : > { %3532 = vmatpush3.bf16.msra.mxu1 %v3807_v63 }
 0xc82   : > { %3533 = vmatprep.subr.bf16.mxu1 %v4241_v2 }
 0xc85   : > { %3534 = vmatpush3.bf16.msra.mxu1 %v3808_v0 }
 0xc86   : > { %3535 = vmatprep.subr.bf16.mxu1 %v4241_v2 }
 0xc89   : > { %3536 = vmatpush3.bf16.msra.mxu1 %v3809_v1 }
 0xc8a   : > { %3537 = vmatprep.subr.bf16.mxu1 %v4241_v2 }
 0xc8d   : > { %3538 = vmatpush3.bf16.msra.mxu1 %v3810_v3 }
 0xc8e   : > { %3539 = vmatprep.subr.bf16.mxu1 %v4241_v2 }
 0xc91   : > { %3540 = vmatpush3.bf16.msra.mxu1 %v3811_v5 }
 0xc92   : > { %3541 = vmatprep.subr.bf16.mxu1 %v4241_v2 }
 0xc95   : > { %3542 = vmatpush3.bf16.msra.mxu1 %v3812_v6 }
 0xc96   : > { %3553 = vmatprep.subr.bf16.mxu1 %v4241_v2 }
 0xc98   : > { %3544 = vmatmul.mubr.bf16.vlgmr.msra.gmra.mxu1 %v4862_v16 }
 0xc99   : > { %3555 = vmatprep.mubr.msk.bf16.mxu1 %vm4242_vm0, %v4241_v2 }
 0xd38   : > { %v1756_v52 = vpop.f32.mrf.mxu1 }
 0xd39   : > { %v1757_v54 = vadd.f32 %v1756_v52, %v1673_v51 }
 0xd3a   : > { %v3505_v55 = vpop.f32.mrf.mxu1 }
 0xd3b   : > { %v1762_v56 = vpack.c.bf16 %v1757_v54, %v1757_v54  ;;  %v1859_v55 = vrot.slane %v4690_v23, %v1858_v53 }
 0xd3c   : > { %v1759_v58 = vpop.f32.mrf.mxu1 }
 0xd3d   : > { %2062 = vrot.lane.b32.xlu1 %v1762_v56, %s4243_s21  ;;  %3550 = vmatmul.mubr.msk.bf16.vlgmr.msra.gmra.mxu0 %vm1086_vm1, %v1762_v56 }
 0xd3e   : > { %v3506_v59 = vpop.f32.mrf.mxu1  ;;  %3560 = vmatpush3.bf16.xpose.msra.mxu0 %v2071_v57  ;;  %3561 = vmatprep.mubr.msk.bf16.mxu0 %vm4242_vm0, %v4241_v2 }
 0xd3f   : > { %3571 = vmatprep.subr.bf16.mxu0 %v4241_v2 }
 0xd41   : > { %2178 = vrot.lane.b32.xlu1 %v1855_v45, %s4244_s13 }
 0xd45   : > { %2176 = vrot.lane.b32.xlu1 %v1762_v56, %s4244_s13 }
 0xd49   : > { %2288 = vrot.lane.b32.xlu1 %v1762_v56, %s4245_s16 }
 0xd58   : > { %v1942_v54 = vpop.f32.mrf.mxu1 }
 0xd59   : > { %v1943_v57 = vadd.f32 %v1942_v54, %v1859_v55 }
 0xd5a   : > { %v3545_v56 = vpop.f32.mrf.mxu1 }
 0xd5b   : > { %v1948_v63 = vpack.c.bf16 %v1943_v57, %v1943_v57  ;;  %v3815_v56 = vld [vmem:[%s4599_s4 + $0x1e8] sm:$0xff]  }
 0xd5c   : > { %v1945_v58 = vpop.f32.mrf.mxu1 }
 0xd5d   : > { %v2019_v0 = vsel %vm1151_vm3, %v1948_v63, 0  ;;  %v3816_v58 = vld [vmem:[%s4599_s4 + $0x1e0] sm:$0xff]  }
 0xd5e   : > { %v3546_v14 = vpop.f32.mrf.mxu1  ;;  %3554 = vmatpush3.bf16.msra.mxu1 %v2019_v0 }
 0xd5f   : > { %3565 = vmatprep.subr.bf16.mxu1 %v4241_v2 }
 0xdaf   : > { %v2063_v7 = vpop.permute.xlu1 %2062 }
 0xdb0   : > { %3562 = vmatmul.mubr.msk.bf16.vlgmr.msra.gmra.mxu0 %vm1086_vm1, %v2063_v7 }
 0xdb1   : > { %3573 = vmatprep.mubr.msk.bf16.mxu0 %vm4242_vm0, %v4241_v2 }
 0xdb3   : > { %v2179_v8 = vpop.permute.xlu1 %2178 }
 0xdb4   : > { %v2184_v9 = vsel %vm1086_vm1, %v2179_v8, 0 }
 0xdb5   : > { %3572 = vmatpush3.bf16.xpose.msra.mxu0 %v2184_v9 }
 0xdb6   : > { %3583 = vmatprep.subr.bf16.mxu0 %v4241_v2 }
 0xdb7   : > { %v2177_v35 = vpop.permute.xlu1 %2176 }
 0xdbb   : > { %v2289_v10 = vpop.permute.xlu1 %2288 }
 0xdbc   : > { %3574 = vmatmul.mubr.msk.bf16.vlgmr.msra.gmra.mxu0 %vm1086_vm1, %v2177_v35 }
 0xdbd   : > { %3584 = vmatpush3.bf16.xpose.msra.mxu0 %v2296_v17  ;;  %3585 = vmatprep.mubr.msk.bf16.mxu0 %vm4242_vm0, %v4241_v2 }
 0xdbe   : > { %3595 = vmatprep.subr.bf16.mxu0 %v4241_v2 }
 0xdc4   : > { %3586 = vmatmul.mubr.msk.bf16.vlgmr.msra.gmra.mxu0 %vm1086_vm1, %v2289_v10 }
 0xdc5   : > { %3611 = vmatprep.mubr.msk.bf16.mxu0 %vm4242_vm0, %v4241_v2 }
 0xdfd   : > { %v1989_v11 = vpop.f32.mrf.mxu0 }
 0xdfe   : > { %v1995_v13 = vmul.f32 0.17677669, %v1989_v11 }
 0xdff   : > { %v3551_v15 = vpop.f32.mrf.mxu0 }
 0xe00   : > { %v2002_v16 = vadd.f32 %v3177_v12, %v1995_v13 }
 0xe01   : > { %v1992_v18 = vpop.f32.mrf.mxu0 }
 0xe02   : > { %v2003_v19 = vsel %vm1135_vm2, %v2002_v16, -inf }
 0xe03   : > { %2004 = vmax.xlane.f32.xlu1 %v2003_v19  ;;  %v3552_v20 = vpop.f32.mrf.mxu0 }
 0xe70   : > { %v2107_v25 = vpop.f32.mrf.mxu0 }
 0xe71   : > { %v2113_v26 = vmul.f32 0.17677669, %v2107_v25 }
 0xe72   : > { %v3563_v27 = vpop.f32.mrf.mxu0 }
 0xe73   : > { %v2114_v28 = vadd.f32 %v3177_v12, %v2113_v26 }
 0xe74   : > { %v2110_v29 = vpop.f32.mrf.mxu0 }
 0xe75   : > { %v2115_v49 = vsel %vm1135_vm2, %v2114_v28, -inf }
 0xe76   : > { %2116 = vmax.xlane.f32.xlu0 %v2115_v49  ;;  %v3564_v30 = vpop.f32.mrf.mxu0 }
 0xe7c   : > { %v2220_v31 = vpop.f32.mrf.mxu0 }
 0xe7d   : > { %v2226_v33 = vmul.f32 0.17677669, %v2220_v31 }
 0xe7e   : > { %v3575_v34 = vpop.f32.mrf.mxu0 }
 0xe7f   : > { %v2227_v36 = vadd.f32 %v3177_v12, %v2226_v33 }
 0xe80   : > { %v2223_v37 = vpop.f32.mrf.mxu0 }
 0xe81   : > { %v2228_v38 = vsel %vm1135_vm2, %v2227_v36, -inf }
 0xe82   : > { %2229 = vmax.xlane.f32.xlu1 %v2228_v38  ;;  %v3576_v40 = vpop.f32.mrf.mxu0 }
 0xe84   : > { %v2332_v42 = vpop.f32.mrf.mxu0 }
 0xe85   : > { %v2338_v43 = vmul.f32 0.17677669, %v2332_v42 }
 0xe86   : > { %v3587_v44 = vpop.f32.mrf.mxu0 }
 0xe87   : > { %v2339_v61 = vadd.f32 %v3177_v12, %v2338_v43 }
 0xe88   : > { %v2335_v45 = vpop.f32.mrf.mxu0 }
 0xe89   : > { %v2340_v46 = vsel %vm1135_vm2, %v2339_v61, -inf }
 0xe8a   : > { %2341 = vmax.xlane.f32.xlu1 %v2340_v46  ;;  %v3588_v47 = vpop.f32.mrf.mxu0 }
 0xe8c   : > { %v2005_v48 = vpop.xlane.xlu1 %2004 }
 0xe8d   : > { %v2006_v51 = vsub.f32 %v2002_v16, %v2005_v48  ;;  %v3813_v48 = vld [vmem:[%s4599_s4 + $0x1f8] sm:$0xff]  }
 0xe8e   : > { %3596 = vmatpush3.bf16.msra.mxu0 %v3813_v48  ;;  %v3847_v48 = vld [vmem:[%s4607_s11 + $0x70] sm:$0xff]  }
 0xe8f   : > { %v2007_v52 = vmul.f32 1.442695, %v2006_v51  ;;  %3597 = vmatprep.subr.bf16.mxu0 %v4241_v2 }
 0xe91   : > { %3879 = vpow2.f32 %v2007_v52  ;;  %v3814_v52 = vld [vmem:[%s4599_s4 + $0x1f0] sm:$0xff]  }
 0xe92   : > { %3598 = vmatpush3.bf16.msra.mxu0 %v3814_v52  ;;  %v3849_v52 = vld [vmem:[%s4607_s11 + $0x68] sm:$0xff]  }
 0xe93   : > { %3599 = vmatprep.subr.bf16.mxu0 %v4241_v2 }
 0xe96   : > { %3600 = vmatpush3.bf16.msra.mxu0 %v3815_v56  ;;  %v3852_v56 = vld [vmem:[%s4607_s11 + $0x20] sm:$0xff]  }
 0xe97   : > { %3601 = vmatprep.subr.bf16.mxu0 %v4241_v2 }
 0xe9a   : > { %3602 = vmatpush3.bf16.msra.mxu0 %v3816_v58  ;;  %v3854_v58 = vld [vmem:[%s4607_s11 + $0x18] sm:$0xff]  }
 0xe9b   : > { %3603 = vmatprep.subr.bf16.mxu0 %v4241_v2 }
 0xe9e   : > { %v3880_v59 = vpop.eup %3879 }
 0xe9f   : > { %v2009_v60 = vsel %vm1135_vm2, %v3880_v59, 0.0 }
 0xea0   : > { %2010 = vadd.xlane.f32.xlu1 %v2009_v60  ;;  %v3817_v60 = vld [vmem:[%s4599_s4 + $0x1d8] sm:$0xff]  }
 0xea1   : > { %3604 = vmatpush3.bf16.msra.mxu0 %v3817_v60 }
 0xea2   : > { %3605 = vmatprep.subr.bf16.mxu0 %v4241_v2 }
 0xeff   : > { %v2117_v1 = vpop.xlane.xlu0 %2116 }
 0xf00   : > { %v2118_v3 = vsub.f32 %v2114_v28, %v2117_v1  ;;  %v3818_v1 = vld [vmem:[%s4599_s4 + $0x1d0] sm:$0xff]  }
 0xf01   : > { %3606 = vmatpush3.bf16.msra.mxu0 %v3818_v1 }
 0xf02   : > { %v2119_v5 = vmul.f32 1.442695, %v2118_v3  ;;  %v3819_v3 = vld [vmem:[%s4599_s4 + $0x1c8] sm:$0xff]   ;;  %3607 = vmatprep.subr.bf16.mxu0 %v4241_v2 }
 0xf04   : > { %3881 = vpow2.f32 %v2119_v5  ;;  %v3820_v5 = vld [vmem:[%s4599_s4 + $0x1c0] sm:$0xff]   ;;  %s5205_s4 = sld [smem:[#allocation25_spill]] }
 0xf05   : > { %3608 = vmatpush3.bf16.msra.mxu0 %v3819_v3 }
 0xf06   : > { %3609 = vmatprep.subr.bf16.mxu0 %v4241_v2 }
 0xf09   : > { %3610 = vmatpush3.bf16.msra.mxu0 %v3820_v5 }
 0xf0b   : > { %v2230_v6 = vpop.xlane.xlu1 %2229 }
 0xf0c   : > { %v2231_v23 = vsub.f32 %v2227_v36, %v2230_v6 }
 0xf0e   : > { %v2232_v7 = vmul.f32 1.442695, %v2231_v23 }
 0xf10   : > { %3883 = vpow2.f32 %v2232_v7 }
 0xf11   : > { %v3882_v8 = vpop.eup %3881 }
 0xf12   : > { %v2121_v9 = vsel %vm1135_vm2, %v3882_v8, 0.0 }
 0xf13   : > { %2122 = vadd.xlane.f32.xlu1 %v2121_v9  ;;  %v2342_v17 = vpop.xlane.xlu1 %2341 }
 0xf14   : > { %v2343_v11 = vsub.f32 %v2339_v61, %v2342_v17 }
 0xf16   : > { %v2344_v12 = vmul.f32 1.442695, %v2343_v11 }
 0xf1d   : > { %v3884_v32 = vpop.eup %3883 }
 0xf1e   : > { %v2234_v35 = vsel %vm1135_vm2, %v3884_v32, 0.0 }
 0xf1f   : > { %2235 = vadd.xlane.f32.xlu0 %v2234_v35 }
 0xf24   : > { %2240 = vrot.lane.b32.xlu1 %v1948_v63, %s4244_s13 }
 0xf29   : > { %v2011_v10 = vpop.xlane.xlu1 %2010 }
 0xf2a   : > { %3885 = vrcp.f32 %v2011_v10 }
 0xf2b   : > { %3887 = vpow2.f32 %v2344_v12  ;;  %v3821_v12 = vld [vmem:[%s4605_s27 + $0x70] ss:$8 sps:$4 sm:$0xff]  }
 0xf35   : > { %2128 = vrot.lane.b32.xlu0 %v1948_v63, %s4243_s21 }
 0xf37   : > { %v3886_v13 = vpop.eup %3885 }
 0xf38   : > { %v2013_v15 = vmul.f32 %v3886_v13, %v3880_v59  ;;  %v3888_v18 = vpop.eup %3887  ;;  %v3823_v13 = vld [vmem:[%s4605_s27 + $0x74] ss:$8 sps:$4 sm:$0xff]  }
 0xf39   : > { %v2346_v19 = vsel %vm1135_vm2, %v3888_v18, 0.0 }
 0xf3a   : > { %v2014_v16 = vpack.c.bf16 %v2013_v15, %v2013_v15  ;;  %v2418_v15 = vsub.s32 7, %v4684_v21 }
 0xf3c   : > { %3556 = vmatmul.mubr.msk.bf16.vlgmr.msra.gmra.mxu1 %vm1135_vm2, %v2014_v16  ;;  %v3899_v16 = vld [vmem:[%s4628_s18] sm:$0xff] }
 0xf3d   : > { %3567 = vmatprep.mubr.msk.bf16.mxu1 %vm4242_vm0, %v4241_v2 }
 0xf48   : > { %2347 = vadd.xlane.f32.xlu1 %v2346_v19 }
 0xf59   : > { %2352 = vrot.lane.b32.xlu1 %v1948_v63, %s4245_s16 }
 0xf9c   : > { %v2123_v20 = vpop.xlane.xlu1 %2122 }
 0xf9d   : > { %3889 = vrcp.f32 %v2123_v20 }
 0xfa0   : > { %v2241_v49 = vpop.permute.xlu1 %2240 }
 0xfa1   : > { %v2246_v31 = vsel %vm1151_vm3, %v2241_v49, 0  ;;  %v3826_v49 = vld [vmem:[%s4605_s27 + $0x64] ss:$8 sps:$4 sm:$0xff]  }
 0xfa8   : > { %v2236_v25 = vpop.xlane.xlu0 %2235 }
 0xfa9   : > { %3891 = vrcp.f32 %v2236_v25 }
 0xfaa   : > { %v3890_v26 = vpop.eup %3889 }
 0xfab   : > { %v2125_v27 = vmul.f32 %v3890_v26, %v3882_v8 }
 0xfac   : > { %v2129_v28 = vpop.permute.xlu0 %2128 }
 0xfad   : > { %v2134_v29 = vsel %vm1151_vm3, %v2129_v28, 0  ;;  %v2126_v30 = vpack.c.bf16 %v2125_v27, %v2125_v27 }
 0xfae   : > { %3566 = vmatpush3.bf16.msra.mxu1 %v2134_v29 }
 0xfaf   : > { %3577 = vmatprep.subr.bf16.mxu1 %v4241_v2 }
 0xfb1   : > { %3568 = vmatmul.mubr.msk.bf16.vlgmr.msra.gmra.mxu1 %vm1135_vm2, %v2126_v30  ;;  %v3824_v30 = vld [vmem:[%s4605_s27 + $0x60] ss:$8 sps:$4 sm:$0xff]  }
 0xfb2   : > { %3578 = vmatpush3.bf16.msra.mxu1 %v2246_v31  ;;  %3579 = vmatprep.mubr.msk.bf16.mxu1 %vm4242_vm0, %v4241_v2  ;;  %v3829_v31 = vld [vmem:[%s4605_s27 + $0x54] ss:$8 sps:$4 sm:$0xff]  }
 0xfb3   : > { %3589 = vmatprep.subr.bf16.mxu1 %v4241_v2 }
 0xfb6   : > { %v3892_v33 = vpop.eup %3891 }
 0xfb7   : > { %v2238_v34 = vmul.f32 %v3892_v33, %v3884_v32  ;;  %v3827_v33 = vld [vmem:[%s4605_s27 + $0x50] ss:$8 sps:$4 sm:$0xff]  }
 0xfb9   : > { %v2239_v36 = vpack.c.bf16 %v2238_v34, %v2238_v34  ;;  %v3832_v34 = vld [vmem:[%s4605_s27 + $0x44] ss:$8 sps:$4 sm:$0xff]  }
 0xfbb   : > { %3580 = vmatmul.mubr.msk.bf16.vlgmr.msra.gmra.mxu1 %vm1135_vm2, %v2239_v36  ;;  %v3835_v36 = vld [vmem:[%s4605_s27 + $0x34] ss:$8 sps:$4 sm:$0xff]  }
 0xfbc   : > { %3591 = vmatprep.mubr.msk.bf16.mxu1 %vm4242_vm0, %v4241_v2 }
 0xfd1   : > { %v2348_v37 = vpop.xlane.xlu1 %2347 }
 0xfd2   : > { %3893 = vrcp.f32 %v2348_v37  ;;  %v3833_v37 = vld [vmem:[%s4605_s27 + $0x30] ss:$8 sps:$4 sm:$0xff]  }
 0xfd5   : > { %v2353_v38 = vpop.permute.xlu1 %2352 }
 0xfd6   : > { %v2358_v40 = vsel %vm1151_vm3, %v2353_v38, 0  ;;  %v4246_v38 = vmov 0  }
 0xfd7   : > { %3590 = vmatpush3.bf16.msra.mxu1 %v2358_v40  ;;  %v3838_v40 = vld [vmem:[%s4605_s27 + $0x24] ss:$8 sps:$4 sm:$0xff]  }
 0xfd8   : > { %2624 = vmatprep.subr.bf16.mxu1 %v3823_v13  ;;  %v3860_v13 = vld [vmem:[%s4607_s11] sm:$0xff]  }
 0xfdf   : > { %v3894_v42 = vpop.eup %3893 }
 0xfe0   : > { %v2350_v43 = vmul.f32 %v3894_v42, %v3888_v18  ;;  %v2419_v18 = vrot.slane %v3899_v16, %v2418_v15  ;;  %v3836_v42 = vld [vmem:[%s4605_s27 + $0x20] ss:$8 sps:$4 sm:$0xff]  }
 0xfe2   : > { %v2351_v44 = vpack.c.bf16 %v2350_v43, %v2350_v43  ;;  %v3841_v43 = vld [vmem:[%s4605_s27 + $0x14] ss:$8 sps:$4 sm:$0xff]  }
 0xfe4   : > { %3592 = vmatmul.mubr.msk.bf16.vlgmr.msra.gmra.mxu1 %vm1135_vm2, %v2351_v44  ;;  %v3839_v44 = vld [vmem:[%s4605_s27 + $0x10] ss:$8 sps:$4 sm:$0xff]  }
 0xfe5   : > { %2625 = vmatpush1.bf16.msra.mxu1 %v3821_v12  ;;  %2656 = vmatprep.mubr.bf16.mxu1 %v4246_v38  ;;  %v3859_v12 = vld [vmem:[%s4607_s11 + $0x40] sm:$0xff]  }
 0xfe6   : > { %2626 = vmatprep.subr.bf16.mxu1 %v3826_v49 }
 0xfe9   : > { %2627 = vmatpush1.bf16.msra.mxu1 %v3824_v30 }
 0xfea   : > { %2628 = vmatprep.subr.bf16.mxu1 %v3829_v31  ;;  %v2672_v31 = vrot.slane %v4876_v4, %v4693_v24 }
 0xfed   : > { %2629 = vmatpush1.bf16.msra.mxu1 %v3827_v33 }
 0xfee   : > { %2630 = vmatprep.subr.bf16.mxu1 %v3832_v34 }
 0xffc   : > { %v2055_v61 = vpop.f32.mrf.mxu1 }
 0xffe   : > { %v3557_v45 = vpop.f32.mrf.mxu1 }
 0xfff   : > { %v3842_v45 = vld [vmem:[%s4605_s27] ss:$8 sps:$4 sm:$0xff]  }
0x1000   : > { %v2058_v46 = vpop.f32.mrf.mxu1 }
0x1001   : > { %v3845_v46 = vld [vmem:[%s4607_s11 + $0x78] sm:$0xff]  }
0x1002   : > { %v3558_v47 = vpop.f32.mrf.mxu1  ;;  %3337 = vmatprep.subr.bf16.mxu0 %v3845_v46  ;;  %v2826_v46 = vrot.slane %v4876_v4, %v1765_v41 }
0x1003   : > { %v3846_v47 = vld [vmem:[%s4607_s11 + $0x38] sm:$0xff]  }
0x1071   : > { %v2170_v51 = vpop.f32.mrf.mxu1 }
0x1072   : > { %2401 = vrot.lane.b32.xlu0 %v2170_v51, %s4245_s16  ;;  %v3848_v51 = vld [vmem:[%s4607_s11 + $0x30] sm:$0xff]  }
0x1073   : > { %v3569_v54 = vpop.f32.mrf.mxu1 }
0x1074   : > { %v3850_v54 = vld [vmem:[%s4607_s11 + $0x28] sm:$0xff]  }
0x1075   : > { %v2173_v55 = vpop.f32.mrf.mxu1 }
0x1076   : > { %v3851_v55 = vld [vmem:[%s4607_s11 + $0x60] sm:$0xff]  }
0x1077   : > { %v3570_v57 = vpop.f32.mrf.mxu1 }
0x1078   : > { %v3853_v57 = vld [vmem:[%s4607_s11 + $0x58] sm:$0xff]  }
0x107b   : > { %v2282_v59 = vpop.f32.mrf.mxu1 }
0x107c   : > { %2405 = vrot.lane.b32.xlu1 %v2282_v59, %s4244_s13  ;;  %v3855_v59 = vld [vmem:[%s4607_s11 + $0x50] sm:$0xff]  }
0x107d   : > { %v3581_v14 = vpop.f32.mrf.mxu1 }
0x107e   : > { %v3856_v14 = vld [vmem:[%s4607_s11 + $0x10] sm:$0xff]  }
0x107f   : > { %v2285_v63 = vpop.f32.mrf.mxu1 }
0x1081   : > { %v3582_v0 = vpop.f32.mrf.mxu1 }
0x10a4   : > { %v2394_v6 = vpop.f32.mrf.mxu1 }
0x10a5   : > { %2409 = vrot.lane.b32.xlu0 %v2394_v6, %s4243_s21 }
0x10a6   : > { %v3593_v23 = vpop.f32.mrf.mxu1 }
0x10a7   : > { %v2525_v23 = vrot.slane %v4876_v4, %v1554_v62  ;;  %v805_v62 = vld [vmem:[%s4626_s20] sm:$0x3] }
0x10a8   : > { %v2397_v7 = vpop.f32.mrf.mxu1  ;;  %v2537_v15 = vrot.slane %v805_v62, %v4693_v24  ;;  %v2541_v16 = vrot.slane %v805_v62, %v4687_v22 }
0x10aa   : > { %v3594_v8 = vpop.f32.mrf.mxu1 }
0x10e4   : > { %v2402_v9 = vpop.permute.xlu0 %2401 }
0x10e5   : > { %v2412_v35 = vsel %vm1086_vm1, %v2055_v61, %v2402_v9  ;;  %v3844_v61 = vld [vmem:[%s4605_s27 + $0x4] ss:$8 sps:$4 sm:$0xff]   ;;  %v2530_v9 = vrot.slane %v4876_v4, %v1672_v50 }
0x10ee   : > { %v2406_v32 = vpop.permute.xlu1 %2405 }
0x10ef   : > { %v2413_v17 = vsel %vm1547_vm4, %v2412_v35, %v2406_v32 }
0x1117   : > { %v2410_v10 = vpop.permute.xlu0 %2409 }
0x1118   : > { %v2414_v2 = vsel %vm1549_vm5, %v2413_v17, %v2410_v10 }
0x1119   : > { %v2415_v11 = vpack.c.bf16 %v2414_v2, %v2414_v2  ;;  %v3857_v2 = vld [vmem:[%s4607_s11 + $0x48] sm:$0xff]  }
0x111b   : > { %3612 = vmatmul.mubr.bf16.vlgmr.msra.gmra.mxu0 %v2415_v11  ;;  %v3858_v11 = vld [vmem:[%s4607_s11 + $0x8] sm:$0xff]   ;;  %s3226_s11 = sshll.u32 %s5205_s4, 7 }
0x111c   : > { %3338 = vmatpush3.bf16.msra.mxu0 %v3846_v47  ;;  %s2846_s12 = scalar_lea.hbm %s5207_s1, %s3226_s11 }
0x111d   : > { %3339 = vmatprep.subr.bf16.mxu0 %v3847_v48 }
0x1120   : > { %3340 = vmatpush3.bf16.msra.mxu0 %v3848_v51  ;;  %v2831_v51 = vrot.slane %v4876_v4, %v1858_v53 }
0x1121   : > { %3341 = vmatprep.subr.bf16.mxu0 %v3849_v52 }
0x1124   : > { %3342 = vmatpush3.bf16.msra.mxu0 %v3850_v54 }
0x1125   : > { %3343 = vmatprep.subr.bf16.mxu0 %v3851_v55 }
0x1128   : > { %3344 = vmatpush3.bf16.msra.mxu0 %v3852_v56 }
0x1129   : > { %3345 = vmatprep.subr.bf16.mxu0 %v3853_v57 }
0x112c   : > { %3346 = vmatpush3.bf16.msra.mxu0 %v3854_v58 }
0x112d   : > { %3347 = vmatprep.subr.bf16.mxu0 %v3855_v59 }
0x1130   : > { %3348 = vmatpush3.bf16.msra.mxu0 %v3856_v14 }
0x1131   : > { %3349 = vmatprep.subr.bf16.mxu0 %v3857_v2 }
0x1134   : > { %3350 = vmatpush3.bf16.msra.mxu0 %v3858_v11 }
0x1135   : > { %3351 = vmatprep.subr.bf16.mxu0 %v3859_v12 }
0x1138   : > { %3352 = vmatpush3.bf16.msra.mxu0 %v3860_v13 }
0x11db   : > { %v2502_v19 = vpop.f32.mrf.mxu0 }
0x11dc   : > { %v2503_v20 = vadd.f32 %v2502_v19, %v2419_v18 }
0x11dd   : > { %v3613_v25 = vpop.f32.mrf.mxu0 }
0x11de   : > { %v5005_v26 = vadd.f32 %v2503_v20, %v4883_v39  ;;  %v3830_v39 = vld [vmem:[%s4605_s27 + $0x40] ss:$8 sps:$4 sm:$0xff]  }
0x11df   : > { %v2505_v27 = vpop.f32.mrf.mxu0  ;;  %2631 = vmatpush1.bf16.msra.mxu1 %v3830_v39 }
0x11e0   : > { %2509 = vadd.xlane.f32.xlu1 %v5005_v26  ;;  %v2512_v28 = vmul.f32 %v5005_v26, %v5005_v26  ;;  %2632 = vmatprep.subr.bf16.mxu1 %v3835_v36 }
0x11e1   : > { %v3614_v29 = vpop.f32.mrf.mxu0 }
0x11e2   : > { %2513 = vadd.xlane.f32.xlu0 %v2512_v28 }
0x11e3   : > { %2633 = vmatpush1.bf16.msra.mxu1 %v3833_v37 }
0x11e4   : > { %2634 = vmatprep.subr.bf16.mxu1 %v3838_v40 }
0x11e7   : > { %2635 = vmatpush1.bf16.msra.mxu1 %v3836_v42 }
0x11e8   : > { %2636 = vmatprep.subr.bf16.mxu1 %v3841_v43 }
0x11eb   : > { %2637 = vmatpush1.bf16.msra.mxu1 %v3839_v44 }
0x11ec   : > { %2638 = vmatprep.subr.bf16.mxu1 %v3844_v61 }
0x11ef   : > { %2639 = vmatpush1.bf16.msra.mxu1 %v3842_v45 }
0x1269   : > { %v2510_v60 = vpop.xlane.xlu1 %2509 }
0x126a   : > { %v2511_v63 = vmul.f32 0.0078125, %v2510_v60 }
0x126b   : > { %v2514_v0 = vpop.xlane.xlu0 %2513 }
0x126c   : > { %v2516_v1 = vmul.f32 %v2511_v63, %v2511_v63  ;;  %v2515_v3 = vmul.f32 0.0078125, %v2514_v0  ;;  %v2518_v7 = vsub.f32 %v5005_v26, %v2511_v63 }
0x126e   : > { %v2517_v5 = vsub.f32 %v2515_v3, %v2516_v1 }
0x1270   : > { %v2519_v6 = vadd.f32 1e-06, %v2517_v5 }
0x1272   : > { %3895 = vrsqrt.f32 %v2519_v6 }
0x127f   : > { %v3896_v8 = vpop.eup %3895 }
0x1280   : > { %v2521_v32 = vmul.f32 %v3896_v8, %v2518_v7 }
0x1282   : > { %v2526_v35 = vmul.f32 %v2525_v23, %v2521_v32 }
0x1284   : > { %v2531_v17 = vadd.f32 %v2530_v9, %v2526_v35 }
0x1286   : > { %v2532_v10 = vpack.c.bf16 %v2531_v17, %v2531_v17 }
0x1288   : > { %2657 = vmatmul.mubr.bf16.vlgmr.msra.gmra.mxu1 %v2532_v10 }
0x1348   : > { %v2658_v18 = vpop.f32.mrf.mxu1 }
0x1349   : > { %v2659_v50 = vadd.f32 %v2658_v18, %v2537_v15 }
0x134a   : > { %v2660_v19 = vpop.f32.mrf.mxu1 }
0x134b   : > { %v2661_v20 = vadd.f32 %v2660_v19, %v2541_v16  ;;  %v2665_v25 = vmax.f32 %v2659_v50, 0.0 }
0x134c   : > { %v2662_v26 = vpop.f32.mrf.mxu1 }
0x134d   : > { %v2666_v27 = vmax.f32 %v2661_v20, 0.0  ;;  %v2667_v49 = vpack.c.bf16 %v2665_v25, %v2665_v25 }
0x134e   : > { %v2663_v28 = vpop.f32.mrf.mxu1 }
0x134f   : > { %v2668_v29 = vpack.c.bf16 %v2666_v27, %v2666_v27 }
0x1351   : > { %2801 = vmatprep.mubr.bf16.mxu0 %v2668_v29 }
0x1352   : > { %2802 = vmatmul.mubr.bf16.vlgmr.msra.gmra.mxu0 %v2667_v49 }
0x1412   : > { %v3353_v30 = vpop.f32.mrf.mxu0 }
0x1414   : > { %v3354_v33 = vpop.f32.mrf.mxu0 }
0x1415   : > { %v3355_v39 = vadd.f32 %v3354_v33, %v3353_v30 }
0x1416   : > { %v3356_v34 = vpop.f32.mrf.mxu0 }
0x1417   : > { %v2804_v22 = vadd.f32 %v3355_v39, %v2672_v31 }
0x1418   : > { %v3357_v36 = vpop.f32.mrf.mxu0 }
0x1419   : > { %v2809_v37 = vadd.f32 %v2804_v22, %v2531_v17 }
0x141b   : > { %2810 = vadd.xlane.f32.xlu0 %v2809_v37  ;;  %v2813_v38 = vmul.f32 %v2809_v37, %v2809_v37 }
0x141d   : > { %2814 = vadd.xlane.f32.xlu1 %v2813_v38 }
0x14a4   : > { %v2811_v40 = vpop.xlane.xlu0 %2810 }
0x14a5   : > { %v2812_v42 = vmul.f32 0.0078125, %v2811_v40 }
0x14a6   : > { %v2815_v43 = vpop.xlane.xlu1 %2814 }
0x14a7   : > { %v2817_v44 = vmul.f32 %v2812_v42, %v2812_v42  ;;  %v2816_v61 = vmul.f32 0.0078125, %v2815_v43  ;;  %v2819_v47 = vsub.f32 %v2809_v37, %v2812_v42 }
0x14a9   : > { %v2818_v45 = vsub.f32 %v2816_v61, %v2817_v44 }
0x14ab   : > { %v2820_v24 = vadd.f32 1e-06, %v2818_v45 }
0x14ad   : > { %3897 = vrsqrt.f32 %v2820_v24 }
0x14ba   : > { %v3898_v48 = vpop.eup %3897 }
0x14bb   : > { %v2822_v52 = vmul.f32 %v3898_v48, %v2819_v47 }
0x14bd   : > { %v2827_v54 = vmul.f32 %v2826_v46, %v2822_v52 }
0x14bf   : > { %v2832_v55 = vadd.f32 %v2831_v51, %v2827_v54 }
0x14c1   : > { %2833 = vst [vmem:[%s4631_s28] sm:$0xff] %v2832_v55 }
0x14c2   : > { %4109 = shalt.err (!%p4106_p12)
}
0x14c3   : > { %s4110_s29 = scalar_lea.hbm %s2846_s12, 128  ;;  %s4114_s20 = scalar_lea.hbm %s5207_s1, 256 }
0x14c4   : > { %p4111_p0 = scmp.ne.s32.totalorder %s2846_s12, %s4110_s29  ;;  %p4115_p3 = scmp.lt.s32.totalorder %s2846_s12, %s5207_s1 }
0x14c5   : > { %p4116_p11 = scmp.lt.s32.totalorder %s4114_s20, %s4110_s29 }
0x14c6   : > { %p4112_p5 = pnand %p4111_p0, %p4421_p7 }
0x14c7   : > { %p4117_p13 = por %p4116_p11, %p4115_p3 }
0x14c8   : > { %p4113_p4 = pneg %p4112_p5 }
0x14ca   : > { %p4118_p8 = pnand %p4117_p13, %p4113_p4 }
0x14cc   : > { %4121 = shalt.err (!%p4118_p8)
}
0x14cd   : > { %3629 = dma.vmem_to_hbm [thread:$0]  (%p4421_p7), %s2849_s23, 128, %s2846_s12, %s2835_s10  }
0x14ce PF: > { %s5208_s21 = sld [smem:[#allocation27_spill]] }
0x14cf   : > { %s5209_s13 = sld [smem:[#allocation22_spill]] }
0x14d0   : > { %s5210_s16 = sld [smem:[#allocation36_spill]] }
0x14d4   : > { %p3658_p2 = scmp.ge.s32.totalorder %s5208_s21, 2 }
0x14d5   : > { %s2860_s30 = sand.u32 1, %s5209_s13  }
0x14d6   : > { %p5211_p6 = scmp.ne.s32.totalorder %s5210_s16, 0  ;;  %s2861_s8 = scalar_lea.sflag [#allocation4], %s2860_s30 }
0x14d8   : > { %p3654_p9 = pnand %p3658_p2, %p5211_p6 }
0x14da   : > { %p3655_p1 = pneg %p3654_p9 }
0x14dc   : > { %4183 = dma.done.wait (%p3655_p1), %s2861_s8, 128  }
0x14dd   : > { %4185 = vsyncadd (%p3655_p1), %s2861_s8, 4294967168  ;;  %s34_s19 = sadd.s32 1, %s5208_s21   ;;  %s5212_s30 = sld [smem:[#allocation20_spill]] }
0x14de   : > { %p31_p10 = scmp.ge.s32.totalorder %s34_s19, 6   ;;  %s5213_s10 = sld [smem:[#allocation21_spill]] }
0x14df   : > { %s5214_s11 = sld [smem:[#allocation32_spill]]  ;;  %s5220_s13 = smov %s4208_s14 }
0x14e0   : > { %s5215_s12 = sld [smem:[#allocation23_spill]]  ;;  %s5222_s15 = smov %s4220_s17 }
0x14e1   : > { %s5216_s26 = sld [smem:[#allocation33_spill]] }
0x14e2   : > { %s5217_s16 = sld [smem:[#allocation26_spill]] }
0x14e3   : > { %s5218_s4 = sld [smem:[#allocation29_spill]] }
0x14e4   : > { %s5219_s18 = sld [smem:[#allocation30_spill]] }
0x14e5   :  { %33 = sbr.rel (!%p31_p10) target bundleno = 22 (0x16), region = 183 }
0x14e7   : > { %s5221_s14 = smov %s5216_s26 }
0x14e9   : > { %s5223_s17 = smov %s5218_s4 }
0x14ea   :  { %2866 = vsyncpa [#allocation3], 1 }
0x14eb   :  { %2868 = vsyncpa [#allocation3 + $0x1], 1 }
0x14ec   :  { %2869 = vsyncpa [#allocation6], 1 }
0x14ed   :  { %2871 = vsyncpa [#allocation6 + $0x1], 1 }
0x14ee   :  { %2872 = vsyncpa [#allocation9], 1 }
0x14ef   :  { %2874 = vsyncpa [#allocation9 + $0x1], 1 }
0x14f0   :  { %2875 = vsyncpa [#allocation12], 1 }
0x14f1   :  { %2877 = vsyncpa [#allocation12 + $0x1], 1 }
0x14f2   :  { %2878 = vsyncpa [#allocation4], 1 }
0x14f3   :  { %2880 = vsyncpa [#allocation4 + $0x1], 1 }

</bundles_post_ra>
